<compile_context>
chip_gen: v7x
topology: tpu7x:2x2x1
jax: 0.10.0
libtpu: 0.0.40
codegen_flags: <defaults>
</compile_context>

<pallas_src>
from typing import NamedTuple, Tuple

import jax
import jax.numpy as jnp
from jax.experimental import pallas as pl
from jax.experimental.pallas import tpu as pltpu

LANE = 128


def _round_up(x, m):
    return ((x + m - 1) // m) * m


def _has_multiple_tensorcores():
    """True on chips whose grid axes can shard across >1 TensorCore (v4/v5p
    megacore, v7x).  v5e/v6e have a single TC: splitting the batch there only
    halves the MXU M dimension and adds per-step pipeline overhead."""
    try:
        kind = jax.devices()[0].device_kind.lower()
    except Exception:
        return False
    return any(t in kind for t in ("v4", "v5p", "v5 p", "v7", "tpu7"))


def _vmem_capacity_bytes():
    try:
        info = pltpu.get_tpu_info()
        return int(getattr(info, "vmem_capacity_bytes", 64 << 20))
    except Exception:
        return 64 << 20


class PackedParams(NamedTuple):
    arrays: Tuple[jax.Array, ...]   # w0, b0, w1, b1, ...
    dims: Tuple[int, ...]           # logical feature dims along the chain
    pdims: Tuple[int, ...]          # lane-padded feature dims
    compute_dtype: jnp.dtype        # MXU dtype (weights + matmul lhs)


def prepack_params(params, compute_dtype=jnp.bfloat16):
    """Pad + cast parameters ONCE; cache the result across forward calls.

    params: list of (W [in, out] f32, b [1, out] f32).  Every feature dim is
    zero-padded to a multiple of 128 so all matmuls / stores are lane-dense.
    Padding is exact: padded weight rows/cols and bias lanes are 0, so padded
    activation lanes stay exactly 0 through tanh.  Weights are cast to
    `compute_dtype` (bf16 default: f32 MXU is emulated on v5e and slower on
    v6e/v7x); biases and all elementwise math stay f32.
    """
    # TODO(synk): optional fp8 weight path for v7x (per-output-channel scale
    # folded into the bias / a post-scale) to quarter weight DMA + VMEM.
    compute_dtype = jnp.dtype(compute_dtype)
    dims = [params[0][0].shape[0]] + [w.shape[1] for (w, _) in params]
    pdims = [_round_up(d, LANE) for d in dims]
    arrays = []
    for li, (w, b) in enumerate(params):
        pw = jnp.zeros((pdims[li], pdims[li + 1]), jnp.float32)
        pw = pw.at[: w.shape[0], : w.shape[1]].set(w).astype(compute_dtype)
        pb = jnp.zeros((1, pdims[li + 1]), jnp.float32)
        pb = pb.at[:, : b.shape[1]].set(b)            # biases stay f32
        arrays.extend([pw, pb])
    arrays = jax.block_until_ready(arrays)
    return PackedParams(tuple(arrays), tuple(dims), tuple(pdims), compute_dtype)


def _make_kernel(n_layers, compute_dtype):
    """Fused forward for one batch tile: n_layers Linear layers, tanh between
    them, sigmoid (via the tanh identity) on the last one."""

    def kernel(x_ref, *refs):
        o_ref = refs[-1]
        p = refs[:-1]                   # w0, b0, w1, b1, ...
        h = x_ref[...]                  # streamed in compute_dtype
        for li in range(n_layers):
            w = p[2 * li][...]
            b = p[2 * li + 1][...]
            lhs = h if h.dtype == compute_dtype else h.astype(compute_dtype)
            z = jnp.dot(lhs, w, preferred_element_type=jnp.float32) + b
            if li == n_layers - 1:
                h = 0.5 * jnp.tanh(0.5 * z) + 0.5      # sigmoid(z), f32
            else:
                h = jnp.tanh(z)                        # f32
        o_ref[...] = h.astype(o_ref.dtype)

    return kernel


def nn_autoencoder_forward(x, params=None, *, packed=None, batch_tile=256,
                           compute_dtype=jnp.bfloat16):
    """x: [B, size] float32.  Pass either raw `params` (padded per call) or a
    `packed=prepack_params(...)` result (preferred; repeated calls then stay
    purely kernel-bound).  Returns [B, size] float32."""
    if packed is None:
        packed = prepack_params(params, compute_dtype)
    compute_dtype = jnp.dtype(packed.compute_dtype)
    dims, pdims, arrays = packed.dims, packed.pdims, packed.arrays
    n_layers = len(dims) - 1

    B, size = x.shape
    assert size == dims[0], (size, dims[0])

    # Stream the input tile in the MXU dtype (halves input DMA for bf16).
    bf16 = jnp.dtype(jnp.bfloat16)
    stream_dtype = compute_dtype if compute_dtype == bf16 else jnp.dtype(jnp.float32)
    row_align = 16 if stream_dtype == bf16 else 8

    # Batch tiling: big tiles keep the MXU occupied.  Only split the batch
    # into >=2 grid steps on chips with >1 TensorCore.
    if _has_multiple_tensorcores() and B > row_align:
        tile = min(batch_tile, _round_up(pl.cdiv(B, 2), row_align))
    else:
        tile = min(batch_tile, _round_up(B, row_align))
    tile = max(row_align, _round_up(tile, row_align))
    B_pad = _round_up(B, tile)
    grid = (B_pad // tile,)

    # Zero-pad batch rows / feature lanes only when needed.
    if B_pad == B and pdims[0] == size and x.dtype == stream_dtype:
        xp = x
    else:
        xp = jnp.zeros((B_pad, pdims[0]), stream_dtype)
        xp = xp.at[:B, :size].set(x.astype(stream_dtype))

    x_spec = pl.BlockSpec((tile, pdims[0]), lambda i: (i, 0))
    o_spec = pl.BlockSpec((tile, pdims[-1]), lambda i: (i, 0))

    param_bytes = sum(int(a.size) * a.dtype.itemsize for a in arrays)
    io_bytes = 2 * (tile * pdims[0] * stream_dtype.itemsize
                    + tile * pdims[-1] * 4)            # double-buffered x / o
    act_bytes = 4 * tile * max(pdims) * 4              # activation temporaries

    def run(single_buffer_params):
        if single_buffer_params:
            # Weights/biases use a constant index_map (fetched once, reused by
            # every grid step): double-buffering them only doubles VMEM.
            param_specs = [pl.BlockSpec(a.shape, lambda i: (0, 0),
                                        pipeline_mode=pl.Buffered(1))
                           for a in arrays]
            need = param_bytes + io_bytes + act_bytes
        else:
            param_specs = [pl.BlockSpec(a.shape, lambda i: (0, 0))
                           for a in arrays]
            need = 2 * param_bytes + io_bytes + act_bytes
        vmem_limit = int(min(max(need + (4 << 20), 32 << 20),
                             _vmem_capacity_bytes()))
        return pl.pallas_call(
            _make_kernel(n_layers, compute_dtype),
            out_shape=jax.ShapeDtypeStruct((B_pad, pdims[-1]), jnp.float32),
            grid_spec=pltpu.PrefetchScalarGridSpec(
                num_scalar_prefetch=0,
                grid=grid,
                in_specs=[x_spec] + param_specs,
                out_specs=o_spec,
            ),
            compiler_params=pltpu.CompilerParams(
                dimension_semantics=("parallel",),
                vmem_limit_bytes=vmem_limit,
            ),
        )(xp, *arrays)

    # TODO(synk): at the module's full default size=100**2 the first/last
    # weights (~20 MB each in bf16) should be K/N-tiled over an extra
    # "arbitrary" grid axis with an f32 VMEM accumulator (needed to fit
    # v7x's 64 MiB/TC) instead of held fully resident.
    try:
        out = run(single_buffer_params=True)
    except Exception:
        # Fallback if pipeline_mode=pl.Buffered(1) is not supported here.
        out = run(single_buffer_params=False)

    if B_pad == B and pdims[-1] == dims[-1]:
        return out
    # NOTE: padded output lanes hold sigmoid(0)=0.5; always slice them away.
    return out[:B, :dims[-1]]


def init_linear(key, fan_in, fan_out):
    """Deterministic init mirroring nn.Linear default (U[-1/sqrt(fan_in), +])."""
    kw, kb = jax.random.split(key)
    bound = 1.0 / (fan_in ** 0.5)
    w = jax.random.uniform(kw, (fan_in, fan_out), jnp.float32, -bound, bound)
    b = jax.random.uniform(kb, (1, fan_out), jnp.float32, -bound, bound)
    return w, b


def build_params(size, n_components, layers, key):
    dims = []
    prev = size
    for units in layers:                 # encoder
        dims.append((prev, units))
        prev = units
    dims.append((prev, n_components))
    prev = n_components
    for units in layers[::-1]:           # decoder
        dims.append((prev, units))
        prev = units
    dims.append((prev, size))

    keys = jax.random.split(key, len(dims))
    return [init_linear(k, fi, fo) for k, (fi, fo) in zip(keys, dims)]


def reference_forward(x, params):
    h = x
    n = len(params)
    for idx, (w, b) in enumerate(params):
        h = h @ w + b
        h = jax.nn.sigmoid(h) if idx == n - 1 else jnp.tanh(h)
    return h


if __name__ == "__main__":
    # Small, module-consistent shapes; batch deliberately NOT a multiple of
    # the tile to exercise the padding/masking path.
    batch = 12
    size = 256
    n_components = 5
    layers = [128, 64]

    key = jax.random.PRNGKey(0)
    kx, kp = jax.random.split(key)
    x = jax.random.uniform(kx, (batch, size), jnp.float32)
    params = build_params(size, n_components, layers, kp)
    ref = reference_forward(x, params)

    # f32 MXU path: exact (1e-5) match against the pure-JAX reference.
    packed_f32 = prepack_params(params, compute_dtype=jnp.float32)
    out_f32 = jax.block_until_ready(
        nn_autoencoder_forward(x, packed=packed_f32, batch_tile=256))
    assert out_f32.shape == (batch, size)
    assert jnp.allclose(out_f32, ref, atol=1e-5, rtol=1e-5), "f32 mismatch vs reference"

    # bf16 MXU path (default fast path on v5e/v6e/v7x): loose sanity check.
    packed_bf16 = prepack_params(params, compute_dtype=jnp.bfloat16)
    out_bf16 = jax.block_until_ready(
        nn_autoencoder_forward(x, packed=packed_bf16, batch_tile=256))
    assert out_bf16.shape == (batch, size)
    assert bool(jnp.all(jnp.isfinite(out_bf16)))
    assert jnp.allclose(out_bf16, ref, atol=0.05), "bf16 path diverged"

    print("KERNEL_OK")
</pallas_src>

<mosaic_0001>
module attributes {stable_mosaic.version = 11 : i64} {
  func.func @kernel(%arg0: i32, %arg1: memref<16x256xf32, #tpu.memory_space<vmem>>, %arg2: memref<256x128xf32, #tpu.memory_space<vmem>>, %arg3: memref<1x128xf32, #tpu.memory_space<vmem>>, %arg4: memref<128x128xf32, #tpu.memory_space<vmem>>, %arg5: memref<1x128xf32, #tpu.memory_space<vmem>>, %arg6: memref<128x128xf32, #tpu.memory_space<vmem>>, %arg7: memref<1x128xf32, #tpu.memory_space<vmem>>, %arg8: memref<128x128xf32, #tpu.memory_space<vmem>>, %arg9: memref<1x128xf32, #tpu.memory_space<vmem>>, %arg10: memref<128x128xf32, #tpu.memory_space<vmem>>, %arg11: memref<1x128xf32, #tpu.memory_space<vmem>>, %arg12: memref<128x256xf32, #tpu.memory_space<vmem>>, %arg13: memref<1x256xf32, #tpu.memory_space<vmem>>, %arg14: memref<16x256xf32, #tpu.memory_space<vmem>>) attributes {dimension_semantics = [#tpu.dimension_semantics<parallel>], iteration_bounds = array<i64: 1>, scalar_prefetch = 0 : i64, scratch_operands = 0 : i64, tpu.core_type = #tpu.core_type<tc>, window_params = [{transform_indices = @transform_0, window_bounds = array<i64: 16, 256>}, {pipeline_mode = #tpu.pipeline_mode<synchronous>, transform_indices = @transform_1, window_bounds = array<i64: 256, 128>}, {pipeline_mode = #tpu.pipeline_mode<synchronous>, transform_indices = @transform_2, window_bounds = array<i64: 1, 128>}, {pipeline_mode = #tpu.pipeline_mode<synchronous>, transform_indices = @transform_3, window_bounds = array<i64: 128, 128>}, {pipeline_mode = #tpu.pipeline_mode<synchronous>, transform_indices = @transform_4, window_bounds = array<i64: 1, 128>}, {pipeline_mode = #tpu.pipeline_mode<synchronous>, transform_indices = @transform_5, window_bounds = array<i64: 128, 128>}, {pipeline_mode = #tpu.pipeline_mode<synchronous>, transform_indices = @transform_6, window_bounds = array<i64: 1, 128>}, {pipeline_mode = #tpu.pipeline_mode<synchronous>, transform_indices = @transform_7, window_bounds = array<i64: 128, 128>}, {pipeline_mode = #tpu.pipeline_mode<synchronous>, transform_indices = @transform_8, window_bounds = array<i64: 1, 128>}, {pipeline_mode = #tpu.pipeline_mode<synchronous>, transform_indices = @transform_9, window_bounds = array<i64: 128, 128>}, {pipeline_mode = #tpu.pipeline_mode<synchronous>, transform_indices = @transform_10, window_bounds = array<i64: 1, 128>}, {pipeline_mode = #tpu.pipeline_mode<synchronous>, transform_indices = @transform_11, window_bounds = array<i64: 128, 256>}, {pipeline_mode = #tpu.pipeline_mode<synchronous>, transform_indices = @transform_12, window_bounds = array<i64: 1, 256>}, {transform_indices = @transform_13, window_bounds = array<i64: 16, 256>}]} {
    %c0 = arith.constant 0 : index
    %c0_0 = arith.constant 0 : index
    %0 = vector.load %arg1[%c0, %c0_0] : memref<16x256xf32, #tpu.memory_space<vmem>>, vector<16x256xf32>
    %c0_1 = arith.constant 0 : index
    %c0_2 = arith.constant 0 : index
    %1 = vector.load %arg2[%c0_1, %c0_2] : memref<256x128xf32, #tpu.memory_space<vmem>>, vector<256x128xf32>
    %c0_3 = arith.constant 0 : index
    %c0_4 = arith.constant 0 : index
    %2 = vector.load %arg3[%c0_3, %c0_4] : memref<1x128xf32, #tpu.memory_space<vmem>>, vector<1x128xf32>
    %cst = arith.constant dense<0.000000e+00> : vector<16x128xf32>
    %3 = tpu.matmul %0, %1, %cst {dimension_numbers = #tpu.dot_dimension_numbers<[1], [0], [0], [1], [0, 0, 1, 1], [], []>} : vector<16x256xf32>, vector<256x128xf32>, vector<16x128xf32> -> vector<16x128xf32>
    %4 = vector.broadcast %2 : vector<1x128xf32> to vector<16x128xf32>
    %5 = arith.addf %3, %4 : vector<16x128xf32>
    %6 = math.tanh %5 : vector<16x128xf32>
    %c0_5 = arith.constant 0 : index
    %c0_6 = arith.constant 0 : index
    %7 = vector.load %arg4[%c0_5, %c0_6] : memref<128x128xf32, #tpu.memory_space<vmem>>, vector<128x128xf32>
    %c0_7 = arith.constant 0 : index
    %c0_8 = arith.constant 0 : index
    %8 = vector.load %arg5[%c0_7, %c0_8] : memref<1x128xf32, #tpu.memory_space<vmem>>, vector<1x128xf32>
    %cst_9 = arith.constant dense<0.000000e+00> : vector<16x128xf32>
    %9 = tpu.matmul %6, %7, %cst_9 {dimension_numbers = #tpu.dot_dimension_numbers<[1], [0], [0], [1], [0, 0, 1, 1], [], []>} : vector<16x128xf32>, vector<128x128xf32>, vector<16x128xf32> -> vector<16x128xf32>
    %10 = vector.broadcast %8 : vector<1x128xf32> to vector<16x128xf32>
    %11 = arith.addf %9, %10 : vector<16x128xf32>
    %12 = math.tanh %11 : vector<16x128xf32>
    %c0_10 = arith.constant 0 : index
    %c0_11 = arith.constant 0 : index
    %13 = vector.load %arg6[%c0_10, %c0_11] : memref<128x128xf32, #tpu.memory_space<vmem>>, vector<128x128xf32>
    %c0_12 = arith.constant 0 : index
    %c0_13 = arith.constant 0 : index
    %14 = vector.load %arg7[%c0_12, %c0_13] : memref<1x128xf32, #tpu.memory_space<vmem>>, vector<1x128xf32>
    %cst_14 = arith.constant dense<0.000000e+00> : vector<16x128xf32>
    %15 = tpu.matmul %12, %13, %cst_14 {dimension_numbers = #tpu.dot_dimension_numbers<[1], [0], [0], [1], [0, 0, 1, 1], [], []>} : vector<16x128xf32>, vector<128x128xf32>, vector<16x128xf32> -> vector<16x128xf32>
    %16 = vector.broadcast %14 : vector<1x128xf32> to vector<16x128xf32>
    %17 = arith.addf %15, %16 : vector<16x128xf32>
    %18 = math.tanh %17 : vector<16x128xf32>
    %c0_15 = arith.constant 0 : index
    %c0_16 = arith.constant 0 : index
    %19 = vector.load %arg8[%c0_15, %c0_16] : memref<128x128xf32, #tpu.memory_space<vmem>>, vector<128x128xf32>
    %c0_17 = arith.constant 0 : index
    %c0_18 = arith.constant 0 : index
    %20 = vector.load %arg9[%c0_17, %c0_18] : memref<1x128xf32, #tpu.memory_space<vmem>>, vector<1x128xf32>
    %cst_19 = arith.constant dense<0.000000e+00> : vector<16x128xf32>
    %21 = tpu.matmul %18, %19, %cst_19 {dimension_numbers = #tpu.dot_dimension_numbers<[1], [0], [0], [1], [0, 0, 1, 1], [], []>} : vector<16x128xf32>, vector<128x128xf32>, vector<16x128xf32> -> vector<16x128xf32>
    %22 = vector.broadcast %20 : vector<1x128xf32> to vector<16x128xf32>
    %23 = arith.addf %21, %22 : vector<16x128xf32>
    %24 = math.tanh %23 : vector<16x128xf32>
    %c0_20 = arith.constant 0 : index
    %c0_21 = arith.constant 0 : index
    %25 = vector.load %arg10[%c0_20, %c0_21] : memref<128x128xf32, #tpu.memory_space<vmem>>, vector<128x128xf32>
    %c0_22 = arith.constant 0 : index
    %c0_23 = arith.constant 0 : index
    %26 = vector.load %arg11[%c0_22, %c0_23] : memref<1x128xf32, #tpu.memory_space<vmem>>, vector<1x128xf32>
    %cst_24 = arith.constant dense<0.000000e+00> : vector<16x128xf32>
    %27 = tpu.matmul %24, %25, %cst_24 {dimension_numbers = #tpu.dot_dimension_numbers<[1], [0], [0], [1], [0, 0, 1, 1], [], []>} : vector<16x128xf32>, vector<128x128xf32>, vector<16x128xf32> -> vector<16x128xf32>
    %28 = vector.broadcast %26 : vector<1x128xf32> to vector<16x128xf32>
    %29 = arith.addf %27, %28 : vector<16x128xf32>
    %30 = math.tanh %29 : vector<16x128xf32>
    %c0_25 = arith.constant 0 : index
    %c0_26 = arith.constant 0 : index
    %31 = vector.load %arg12[%c0_25, %c0_26] : memref<128x256xf32, #tpu.memory_space<vmem>>, vector<128x256xf32>
    %c0_27 = arith.constant 0 : index
    %c0_28 = arith.constant 0 : index
    %32 = vector.load %arg13[%c0_27, %c0_28] : memref<1x256xf32, #tpu.memory_space<vmem>>, vector<1x256xf32>
    %cst_29 = arith.constant dense<0.000000e+00> : vector<16x256xf32>
    %33 = tpu.matmul %30, %31, %cst_29 {dimension_numbers = #tpu.dot_dimension_numbers<[1], [0], [0], [1], [0, 0, 1, 1], [], []>} : vector<16x128xf32>, vector<128x256xf32>, vector<16x256xf32> -> vector<16x256xf32>
    %34 = vector.broadcast %32 : vector<1x256xf32> to vector<16x256xf32>
    %35 = arith.addf %33, %34 : vector<16x256xf32>
    %cst_30 = arith.constant 5.000000e-01 : f32
    %36 = vector.broadcast %cst_30 : f32 to vector<16x256xf32>
    %37 = arith.mulf %36, %35 : vector<16x256xf32>
    %38 = math.tanh %37 : vector<16x256xf32>
    %cst_31 = arith.constant 5.000000e-01 : f32
    %39 = vector.broadcast %cst_31 : f32 to vector<16x256xf32>
    %40 = arith.mulf %39, %38 : vector<16x256xf32>
    %cst_32 = arith.constant 5.000000e-01 : f32
    %41 = vector.broadcast %cst_32 : f32 to vector<16x256xf32>
    %42 = arith.addf %40, %41 : vector<16x256xf32>
    %c0_33 = arith.constant 0 : index
    %c0_34 = arith.constant 0 : index
    %43 = vector.load %arg14[%c0_33, %c0_34] : memref<16x256xf32, #tpu.memory_space<vmem>>, vector<16x256xf32>
    tpu.vector_store %arg14[%c0_33, %c0_34], %42 {strides = array<i32>} : memref<16x256xf32, #tpu.memory_space<vmem>>, vector<16x256xf32>,
    return
  }
  func.func @transform_0(%arg0: i32) -> (i32, i32) {
    %c0_i32 = arith.constant 0 : i32
    %c0_i32_0 = arith.constant 0 : i32
    return %arg0, %c0_i32 : i32, i32
  }
  func.func @transform_1(%arg0: i32) -> (i32, i32) {
    %c0_i32 = arith.constant 0 : i32
    %c0_i32_0 = arith.constant 0 : i32
    %c0_i32_1 = arith.constant 0 : i32
    return %c0_i32, %c0_i32_0 : i32, i32
  }
  func.func @transform_2(%arg0: i32) -> (i32, i32) {
    %c0_i32 = arith.constant 0 : i32
    %c0_i32_0 = arith.constant 0 : i32
    %c0_i32_1 = arith.constant 0 : i32
    return %c0_i32, %c0_i32_0 : i32, i32
  }
  func.func @transform_3(%arg0: i32) -> (i32, i32) {
    %c0_i32 = arith.constant 0 : i32
    %c0_i32_0 = arith.constant 0 : i32
    %c0_i32_1 = arith.constant 0 : i32
    return %c0_i32, %c0_i32_0 : i32, i32
  }
  func.func @transform_4(%arg0: i32) -> (i32, i32) {
    %c0_i32 = arith.constant 0 : i32
    %c0_i32_0 = arith.constant 0 : i32
    %c0_i32_1 = arith.constant 0 : i32
    return %c0_i32, %c0_i32_0 : i32, i32
  }
  func.func @transform_5(%arg0: i32) -> (i32, i32) {
    %c0_i32 = arith.constant 0 : i32
    %c0_i32_0 = arith.constant 0 : i32
    %c0_i32_1 = arith.constant 0 : i32
    return %c0_i32, %c0_i32_0 : i32, i32
  }
  func.func @transform_6(%arg0: i32) -> (i32, i32) {
    %c0_i32 = arith.constant 0 : i32
    %c0_i32_0 = arith.constant 0 : i32
    %c0_i32_1 = arith.constant 0 : i32
    return %c0_i32, %c0_i32_0 : i32, i32
  }
  func.func @transform_7(%arg0: i32) -> (i32, i32) {
    %c0_i32 = arith.constant 0 : i32
    %c0_i32_0 = arith.constant 0 : i32
    %c0_i32_1 = arith.constant 0 : i32
    return %c0_i32, %c0_i32_0 : i32, i32
  }
  func.func @transform_8(%arg0: i32) -> (i32, i32) {
    %c0_i32 = arith.constant 0 : i32
    %c0_i32_0 = arith.constant 0 : i32
    %c0_i32_1 = arith.constant 0 : i32
    return %c0_i32, %c0_i32_0 : i32, i32
  }
  func.func @transform_9(%arg0: i32) -> (i32, i32) {
    %c0_i32 = arith.constant 0 : i32
    %c0_i32_0 = arith.constant 0 : i32
    %c0_i32_1 = arith.constant 0 : i32
    return %c0_i32, %c0_i32_0 : i32, i32
  }
  func.func @transform_10(%arg0: i32) -> (i32, i32) {
    %c0_i32 = arith.constant 0 : i32
    %c0_i32_0 = arith.constant 0 : i32
    %c0_i32_1 = arith.constant 0 : i32
    return %c0_i32, %c0_i32_0 : i32, i32
  }
  func.func @transform_11(%arg0: i32) -> (i32, i32) {
    %c0_i32 = arith.constant 0 : i32
    %c0_i32_0 = arith.constant 0 : i32
    %c0_i32_1 = arith.constant 0 : i32
    return %c0_i32, %c0_i32_0 : i32, i32
  }
  func.func @transform_12(%arg0: i32) -> (i32, i32) {
    %c0_i32 = arith.constant 0 : i32
    %c0_i32_0 = arith.constant 0 : i32
    %c0_i32_1 = arith.constant 0 : i32
    return %c0_i32, %c0_i32_0 : i32, i32
  }
  func.func @transform_13(%arg0: i32) -> (i32, i32) {
    %c0_i32 = arith.constant 0 : i32
    %c0_i32_0 = arith.constant 0 : i32
    return %arg0, %c0_i32 : i32, i32
  }
}

module attributes {stable_mosaic.version = 11 : i64} {
  func.func @kernel(%arg0: i32, %arg1: memref<16x256xf32, #tpu.memory_space<vmem>>, %arg2: memref<256x128xf32, #tpu.memory_space<vmem>>, %arg3: memref<1x128xf32, #tpu.memory_space<vmem>>, %arg4: memref<128x128xf32, #tpu.memory_space<vmem>>, %arg5: memref<1x128xf32, #tpu.memory_space<vmem>>, %arg6: memref<128x128xf32, #tpu.memory_space<vmem>>, %arg7: memref<1x128xf32, #tpu.memory_space<vmem>>, %arg8: memref<128x128xf32, #tpu.memory_space<vmem>>, %arg9: memref<1x128xf32, #tpu.memory_space<vmem>>, %arg10: memref<128x128xf32, #tpu.memory_space<vmem>>, %arg11: memref<1x128xf32, #tpu.memory_space<vmem>>, %arg12: memref<128x256xf32, #tpu.memory_space<vmem>>, %arg13: memref<1x256xf32, #tpu.memory_space<vmem>>, %arg14: memref<16x256xf32, #tpu.memory_space<vmem>>) attributes {dimension_semantics = [#tpu.dimension_semantics<parallel>], iteration_bounds = array<i64: 1>, scalar_prefetch = 0 : i64, scratch_operands = 0 : i64, tpu.core_type = #tpu.core_type<tc>, window_params = [{transform_indices = @transform_0, window_bounds = array<i64: 16, 256>}, {pipeline_mode = #tpu.pipeline_mode<synchronous>, transform_indices = @transform_1, window_bounds = array<i64: 256, 128>}, {pipeline_mode = #tpu.pipeline_mode<synchronous>, transform_indices = @transform_2, window_bounds = array<i64: 1, 128>}, {pipeline_mode = #tpu.pipeline_mode<synchronous>, transform_indices = @transform_3, window_bounds = array<i64: 128, 128>}, {pipeline_mode = #tpu.pipeline_mode<synchronous>, transform_indices = @transform_4, window_bounds = array<i64: 1, 128>}, {pipeline_mode = #tpu.pipeline_mode<synchronous>, transform_indices = @transform_5, window_bounds = array<i64: 128, 128>}, {pipeline_mode = #tpu.pipeline_mode<synchronous>, transform_indices = @transform_6, window_bounds = array<i64: 1, 128>}, {pipeline_mode = #tpu.pipeline_mode<synchronous>, transform_indices = @transform_7, window_bounds = array<i64: 128, 128>}, {pipeline_mode = #tpu.pipeline_mode<synchronous>, transform_indices = @transform_8, window_bounds = array<i64: 1, 128>}, {pipeline_mode = #tpu.pipeline_mode<synchronous>, transform_indices = @transform_9, window_bounds = array<i64: 128, 128>}, {pipeline_mode = #tpu.pipeline_mode<synchronous>, transform_indices = @transform_10, window_bounds = array<i64: 1, 128>}, {pipeline_mode = #tpu.pipeline_mode<synchronous>, transform_indices = @transform_11, window_bounds = array<i64: 128, 256>}, {pipeline_mode = #tpu.pipeline_mode<synchronous>, transform_indices = @transform_12, window_bounds = array<i64: 1, 256>}, {transform_indices = @transform_13, window_bounds = array<i64: 16, 256>}]} {
    %c0 = arith.constant 0 : index
    %c0_0 = arith.constant 0 : index
    %0 = vector.load %arg1[%c0, %c0_0] : memref<16x256xf32, #tpu.memory_space<vmem>>, vector<16x256xf32>
    %c0_1 = arith.constant 0 : index
    %c0_2 = arith.constant 0 : index
    %1 = vector.load %arg2[%c0_1, %c0_2] : memref<256x128xf32, #tpu.memory_space<vmem>>, vector<256x128xf32>
    %c0_3 = arith.constant 0 : index
    %c0_4 = arith.constant 0 : index
    %2 = vector.load %arg3[%c0_3, %c0_4] : memref<1x128xf32, #tpu.memory_space<vmem>>, vector<1x128xf32>
    %cst = arith.constant dense<0.000000e+00> : vector<16x128xf32>
    %3 = tpu.matmul %0, %1, %cst {dimension_numbers = #tpu.dot_dimension_numbers<[1], [0], [0], [1], [0, 0, 1, 1], [], []>} : vector<16x256xf32>, vector<256x128xf32>, vector<16x128xf32> -> vector<16x128xf32>
    %4 = vector.broadcast %2 : vector<1x128xf32> to vector<16x128xf32>
    %5 = arith.addf %3, %4 : vector<16x128xf32>
    %6 = math.tanh %5 : vector<16x128xf32>
    %c0_5 = arith.constant 0 : index
    %c0_6 = arith.constant 0 : index
    %7 = vector.load %arg4[%c0_5, %c0_6] : memref<128x128xf32, #tpu.memory_space<vmem>>, vector<128x128xf32>
    %c0_7 = arith.constant 0 : index
    %c0_8 = arith.constant 0 : index
    %8 = vector.load %arg5[%c0_7, %c0_8] : memref<1x128xf32, #tpu.memory_space<vmem>>, vector<1x128xf32>
    %cst_9 = arith.constant dense<0.000000e+00> : vector<16x128xf32>
    %9 = tpu.matmul %6, %7, %cst_9 {dimension_numbers = #tpu.dot_dimension_numbers<[1], [0], [0], [1], [0, 0, 1, 1], [], []>} : vector<16x128xf32>, vector<128x128xf32>, vector<16x128xf32> -> vector<16x128xf32>
    %10 = vector.broadcast %8 : vector<1x128xf32> to vector<16x128xf32>
    %11 = arith.addf %9, %10 : vector<16x128xf32>
    %12 = math.tanh %11 : vector<16x128xf32>
    %c0_10 = arith.constant 0 : index
    %c0_11 = arith.constant 0 : index
    %13 = vector.load %arg6[%c0_10, %c0_11] : memref<128x128xf32, #tpu.memory_space<vmem>>, vector<128x128xf32>
    %c0_12 = arith.constant 0 : index
    %c0_13 = arith.constant 0 : index
    %14 = vector.load %arg7[%c0_12, %c0_13] : memref<1x128xf32, #tpu.memory_space<vmem>>, vector<1x128xf32>
    %cst_14 = arith.constant dense<0.000000e+00> : vector<16x128xf32>
    %15 = tpu.matmul %12, %13, %cst_14 {dimension_numbers = #tpu.dot_dimension_numbers<[1], [0], [0], [1], [0, 0, 1, 1], [], []>} : vector<16x128xf32>, vector<128x128xf32>, vector<16x128xf32> -> vector<16x128xf32>
    %16 = vector.broadcast %14 : vector<1x128xf32> to vector<16x128xf32>
    %17 = arith.addf %15, %16 : vector<16x128xf32>
    %18 = math.tanh %17 : vector<16x128xf32>
    %c0_15 = arith.constant 0 : index
    %c0_16 = arith.constant 0 : index
    %19 = vector.load %arg8[%c0_15, %c0_16] : memref<128x128xf32, #tpu.memory_space<vmem>>, vector<128x128xf32>
    %c0_17 = arith.constant 0 : index
    %c0_18 = arith.constant 0 : index
    %20 = vector.load %arg9[%c0_17, %c0_18] : memref<1x128xf32, #tpu.memory_space<vmem>>, vector<1x128xf32>
    %cst_19 = arith.constant dense<0.000000e+00> : vector<16x128xf32>
    %21 = tpu.matmul %18, %19, %cst_19 {dimension_numbers = #tpu.dot_dimension_numbers<[1], [0], [0], [1], [0, 0, 1, 1], [], []>} : vector<16x128xf32>, vector<128x128xf32>, vector<16x128xf32> -> vector<16x128xf32>
    %22 = vector.broadcast %20 : vector<1x128xf32> to vector<16x128xf32>
    %23 = arith.addf %21, %22 : vector<16x128xf32>
    %24 = math.tanh %23 : vector<16x128xf32>
    %c0_20 = arith.constant 0 : index
    %c0_21 = arith.constant 0 : index
    %25 = vector.load %arg10[%c0_20, %c0_21] : memref<128x128xf32, #tpu.memory_space<vmem>>, vector<128x128xf32>
    %c0_22 = arith.constant 0 : index
    %c0_23 = arith.constant 0 : index
    %26 = vector.load %arg11[%c0_22, %c0_23] : memref<1x128xf32, #tpu.memory_space<vmem>>, vector<1x128xf32>
    %cst_24 = arith.constant dense<0.000000e+00> : vector<16x128xf32>
    %27 = tpu.matmul %24, %25, %cst_24 {dimension_numbers = #tpu.dot_dimension_numbers<[1], [0], [0], [1], [0, 0, 1, 1], [], []>} : vector<16x128xf32>, vector<128x128xf32>, vector<16x128xf32> -> vector<16x128xf32>
    %28 = vector.broadcast %26 : vector<1x128xf32> to vector<16x128xf32>
    %29 = arith.addf %27, %28 : vector<16x128xf32>
    %30 = math.tanh %29 : vector<16x128xf32>
    %c0_25 = arith.constant 0 : index
    %c0_26 = arith.constant 0 : index
    %31 = vector.load %arg12[%c0_25, %c0_26] : memref<128x256xf32, #tpu.memory_space<vmem>>, vector<128x256xf32>
    %c0_27 = arith.constant 0 : index
    %c0_28 = arith.constant 0 : index
    %32 = vector.load %arg13[%c0_27, %c0_28] : memref<1x256xf32, #tpu.memory_space<vmem>>, vector<1x256xf32>
    %cst_29 = arith.constant dense<0.000000e+00> : vector<16x256xf32>
    %33 = tpu.matmul %30, %31, %cst_29 {dimension_numbers = #tpu.dot_dimension_numbers<[1], [0], [0], [1], [0, 0, 1, 1], [], []>} : vector<16x128xf32>, vector<128x256xf32>, vector<16x256xf32> -> vector<16x256xf32>
    %34 = vector.broadcast %32 : vector<1x256xf32> to vector<16x256xf32>
    %35 = arith.addf %33, %34 : vector<16x256xf32>
    %cst_30 = arith.constant 5.000000e-01 : f32
    %36 = vector.broadcast %cst_30 : f32 to vector<16x256xf32>
    %37 = arith.mulf %36, %35 : vector<16x256xf32>
    %38 = math.tanh %37 : vector<16x256xf32>
    %cst_31 = arith.constant 5.000000e-01 : f32
    %39 = vector.broadcast %cst_31 : f32 to vector<16x256xf32>
    %40 = arith.mulf %39, %38 : vector<16x256xf32>
    %cst_32 = arith.constant 5.000000e-01 : f32
    %41 = vector.broadcast %cst_32 : f32 to vector<16x256xf32>
    %42 = arith.addf %40, %41 : vector<16x256xf32>
    %c0_33 = arith.constant 0 : index
    %c0_34 = arith.constant 0 : index
    %43 = vector.load %arg14[%c0_33, %c0_34] : memref<16x256xf32, #tpu.memory_space<vmem>>, vector<16x256xf32>
    tpu.vector_store %arg14[%c0_33, %c0_34], %42 {strides = array<i32>} : memref<16x256xf32, #tpu.memory_space<vmem>>, vector<16x256xf32>,
    return
  }
  func.func @transform_0(%arg0: i32) -> (i32, i32) {
    %c0_i32 = arith.constant 0 : i32
    %c0_i32_0 = arith.constant 0 : i32
    return %arg0, %c0_i32 : i32, i32
  }
  func.func @transform_1(%arg0: i32) -> (i32, i32) {
    %c0_i32 = arith.constant 0 : i32
    %c0_i32_0 = arith.constant 0 : i32
    %c0_i32_1 = arith.constant 0 : i32
    return %c0_i32, %c0_i32_0 : i32, i32
  }
  func.func @transform_2(%arg0: i32) -> (i32, i32) {
    %c0_i32 = arith.constant 0 : i32
    %c0_i32_0 = arith.constant 0 : i32
    %c0_i32_1 = arith.constant 0 : i32
    return %c0_i32, %c0_i32_0 : i32, i32
  }
  func.func @transform_3(%arg0: i32) -> (i32, i32) {
    %c0_i32 = arith.constant 0 : i32
    %c0_i32_0 = arith.constant 0 : i32
    %c0_i32_1 = arith.constant 0 : i32
    return %c0_i32, %c0_i32_0 : i32, i32
  }
  func.func @transform_4(%arg0: i32) -> (i32, i32) {
    %c0_i32 = arith.constant 0 : i32
    %c0_i32_0 = arith.constant 0 : i32
    %c0_i32_1 = arith.constant 0 : i32
    return %c0_i32, %c0_i32_0 : i32, i32
  }
  func.func @transform_5(%arg0: i32) -> (i32, i32) {
    %c0_i32 = arith.constant 0 : i32
    %c0_i32_0 = arith.constant 0 : i32
    %c0_i32_1 = arith.constant 0 : i32
    return %c0_i32, %c0_i32_0 : i32, i32
  }
  func.func @transform_6(%arg0: i32) -> (i32, i32) {
    %c0_i32 = arith.constant 0 : i32
    %c0_i32_0 = arith.constant 0 : i32
    %c0_i32_1 = arith.constant 0 : i32
    return %c0_i32, %c0_i32_0 : i32, i32
  }
  func.func @transform_7(%arg0: i32) -> (i32, i32) {
    %c0_i32 = arith.constant 0 : i32
    %c0_i32_0 = arith.constant 0 : i32
    %c0_i32_1 = arith.constant 0 : i32
    return %c0_i32, %c0_i32_0 : i32, i32
  }
  func.func @transform_8(%arg0: i32) -> (i32, i32) {
    %c0_i32 = arith.constant 0 : i32
    %c0_i32_0 = arith.constant 0 : i32
    %c0_i32_1 = arith.constant 0 : i32
    return %c0_i32, %c0_i32_0 : i32, i32
  }
  func.func @transform_9(%arg0: i32) -> (i32, i32) {
    %c0_i32 = arith.constant 0 : i32
    %c0_i32_0 = arith.constant 0 : i32
    %c0_i32_1 = arith.constant 0 : i32
    return %c0_i32, %c0_i32_0 : i32, i32
  }
  func.func @transform_10(%arg0: i32) -> (i32, i32) {
    %c0_i32 = arith.constant 0 : i32
    %c0_i32_0 = arith.constant 0 : i32
    %c0_i32_1 = arith.constant 0 : i32
    return %c0_i32, %c0_i32_0 : i32, i32
  }
  func.func @transform_11(%arg0: i32) -> (i32, i32) {
    %c0_i32 = arith.constant 0 : i32
    %c0_i32_0 = arith.constant 0 : i32
    %c0_i32_1 = arith.constant 0 : i32
    return %c0_i32, %c0_i32_0 : i32, i32
  }
  func.func @transform_12(%arg0: i32) -> (i32, i32) {
    %c0_i32 = arith.constant 0 : i32
    %c0_i32_0 = arith.constant 0 : i32
    %c0_i32_1 = arith.constant 0 : i32
    return %c0_i32, %c0_i32_0 : i32, i32
  }
  func.func @transform_13(%arg0: i32) -> (i32, i32) {
    %c0_i32 = arith.constant 0 : i32
    %c0_i32_0 = arith.constant 0 : i32
    return %arg0, %c0_i32 : i32, i32
  }
}

</mosaic_0001>

<bundles_post_ra>
// kernel: tpu_custom_call.1
= control target key start
LH: loop header
LB: loop body
LE: loop exit
PB: predicated region body
PF: predicated region fallthrough
CT: control target
= control target key end

     0   :  { %18 = vsyncpa [#allocation3], 0  ;;  %s1723_s0 = inlined_call_operand.hbm [shape: f32[16,256], index: 0, kind: input, shape index: {}]   ;;  %s1724_s1 = inlined_call_operand.hbm [shape: f32[256,128], index: 1, kind: input, shape index: {}]   ;;  %s1725_s2 = inlined_call_operand.vmem [shape: f32[1,128], index: 2, kind: input, shape index: {}]   ;;  %s1726_s3 = inlined_call_operand.hbm [shape: f32[128,128], index: 3, kind: input, shape index: {}]   ;;  %s1727_s4 = inlined_call_operand.vmem [shape: f32[1,128], index: 4, kind: input, shape index: {}]   ;;  %s1728_s5 = inlined_call_operand.hbm [shape: f32[128,128], index: 5, kind: input, shape index: {}]   ;;  %s1729_s6 = inlined_call_operand.vmem [shape: f32[1,128], index: 6, kind: input, shape index: {}]   ;;  %s1730_s7 = inlined_call_operand.hbm [shape: f32[128,128], index: 7, kind: input, shape index: {}]   ;;  %s1731_s8 = inlined_call_operand.vmem [shape: f32[1,128], index: 8, kind: input, shape index: {}]   ;;  %s1732_s9 = inlined_call_operand.hbm [shape: f32[128,128], index: 9, kind: input, shape index: {}]   ;;  %s1733_s10 = inlined_call_operand.vmem [shape: f32[1,128], index: 10, kind: input, shape index: {}]   ;;  %s1734_s11 = inlined_call_operand.hbm [shape: f32[128,256], index: 11, kind: input, shape index: {}]   ;;  %s1735_s12 = inlined_call_operand.vmem [shape: f32[1,256], index: 12, kind: input, shape index: {}]   ;;  %s1736_s13 = inlined_call_operand.hbm [shape: f32[16,256], index: 13, kind: output, shape index: {}]  }
   0x1   :  { %19 = vsyncpa [#allocation6], 0 }
   0x2   :  { %20 = vsyncpa [#allocation9], 0 }
   0x3   :  { %21 = vsyncpa [#allocation12], 0 }
   0x4   :  { %22 = vsyncpa [#allocation4], 0  ;;  %s1495_s25 = smov [#allocation5]   ;;  %s1309_s29 = scalar_lea.hbm %s1724_s1, 4096 }
   0x5   :  { %s40_s26 = sshll.u32 %s1495_s25, 4  ;;  %p1310_p0 = scmp.ne.s32.totalorder %s1724_s1, %s1309_s29  ;;  %s41_s26 = int_to_ptr.vmem [resolvable:$true] %s40_s26 }
   0x6   :  { %p1313_p1 = scmp.lt.u32.totalorder %s1309_s29, %s1724_s1 }
   0x8   :  { %p1315_p2 = pnand %p1313_p1, %p1310_p0 }
   0xa   :  { %1318 = shalt.err (!%p1315_p2)
}
   0xb   :  { %s1319_s17 = scalar_lea.vmem %s41_s26, 4096  ;;  %p1324_p4 = scmp.lt.s32.totalorder %s41_s26, %s41_s26 }
   0xc   :  { %p1320_p3 = scmp.ne.s32.totalorder %s41_s26, %s1319_s17  ;;  %p1325_p5 = scmp.lt.s32.totalorder %s1319_s17, %s1319_s17 }
   0xe   :  { %p1326_p6 = por %p1325_p5, %p1324_p4 }
  0x10   :  { %p1327_p7 = pnand %p1326_p6, %p1320_p3 }
  0x12   :  { %1330 = shalt.err (!%p1327_p7)
}
  0x13   :  { %s1496_s18 = smov 128   ;;  %s1497_s19 = smov 8  }
  0x14   :  { %46 = dma.hbm_to_vmem [thread:$0]  %s1724_s1, 4096, %s41_s26, [#allocation6], %s1496_s18, %s1496_s18, %s1497_s19  }
  0x15   :  { %s1498_s22 = smov [#allocation8]   ;;  %s1499_s24 = smov [#allocation11]  }
  0x16   :  { %s68_s23 = sshll.u32 %s1498_s22, 4  ;;  %s96_s25 = sshll.u32 %s1499_s24, 4  ;;  %s69_s23 = int_to_ptr.vmem [resolvable:$true] %s68_s23  ;;  %s97_s25 = int_to_ptr.vmem [resolvable:$true] %s96_s25 }
  0x17   :  { %s1331_s29 = scalar_lea.hbm %s1728_s5, 2048 }
  0x18   :  { %p1332_p8 = scmp.ne.s32.totalorder %s1728_s5, %s1331_s29  ;;  %p1335_p9 = scmp.lt.u32.totalorder %s1331_s29, %s1728_s5 }
  0x1a   :  { %p1337_p10 = pnand %p1335_p9, %p1332_p8 }
  0x1c   :  { %1340 = shalt.err (!%p1337_p10)
}
  0x1d   :  { %s1341_s1 = scalar_lea.vmem %s69_s23, 2048  ;;  %p1346_p12 = scmp.lt.s32.totalorder %s69_s23, %s69_s23 }
  0x1e   :  { %p1342_p11 = scmp.ne.s32.totalorder %s69_s23, %s1341_s1  ;;  %p1347_p13 = scmp.lt.s32.totalorder %s1341_s1, %s1341_s1 }
  0x20   :  { %p1348_p0 = por %p1347_p13, %p1346_p12 }
  0x22   :  { %p1349_p1 = pnand %p1348_p0, %p1342_p11 }
  0x24   :  { %1352 = shalt.err (!%p1349_p1)
}
  0x25   :  { %74 = dma.hbm_to_vmem [thread:$0]  %s1728_s5, 2048, %s69_s23, [#allocation9], %s1496_s18, %s1496_s18, %s1497_s19  }
  0x26   :  { %s1353_s22 = scalar_lea.hbm %s1732_s9, 2048 }
  0x27   :  { %p1354_p2 = scmp.ne.s32.totalorder %s1732_s9, %s1353_s22  ;;  %p1357_p3 = scmp.lt.u32.totalorder %s1353_s22, %s1732_s9 }
  0x29   :  { %p1359_p4 = pnand %p1357_p3, %p1354_p2 }
  0x2b   :  { %1362 = shalt.err (!%p1359_p4)
}
  0x2c   :  { %s1363_s30 = scalar_lea.vmem %s97_s25, 2048  ;;  %p1368_p6 = scmp.lt.s32.totalorder %s97_s25, %s97_s25 }
  0x2d   :  { %p1364_p5 = scmp.ne.s32.totalorder %s97_s25, %s1363_s30  ;;  %p1369_p7 = scmp.lt.s32.totalorder %s1363_s30, %s1363_s30 }
  0x2f   :  { %p1370_p8 = por %p1369_p7, %p1368_p6 }
  0x31   :  { %p1371_p9 = pnand %p1370_p8, %p1364_p5 }
  0x33   :  { %1374 = shalt.err (!%p1371_p9)
}
  0x34   :  { %102 = dma.hbm_to_vmem [thread:$0]  %s1732_s9, 2048, %s97_s25, [#allocation12], %s1496_s18, %s1496_s18, %s1497_s19  }
  0x35   :  { %s1500_s14 = smov [#allocation2]   ;;  %s1375_s26 = scalar_lea.hbm %s1723_s0, 512 }
  0x36   :  { %s28_s15 = sshll.u32 %s1500_s14, 4  ;;  %p1376_p10 = scmp.ne.s32.totalorder %s1723_s0, %s1375_s26  ;;  %s29_s15 = int_to_ptr.vmem [resolvable:$true] %s28_s15 }
  0x37   :  { %p1379_p11 = scmp.lt.u32.totalorder %s1375_s26, %s1723_s0 }
  0x39   :  { %p1381_p12 = pnand %p1379_p11, %p1376_p10 }
  0x3b   :  { %1384 = shalt.err (!%p1381_p12)
}
  0x3c   :  { %s1385_s24 = scalar_lea.vmem %s29_s15, 512  ;;  %p1390_p0 = scmp.lt.s32.totalorder %s29_s15, %s29_s15 }
  0x3d   :  { %p1386_p13 = scmp.ne.s32.totalorder %s29_s15, %s1385_s24  ;;  %p1391_p1 = scmp.lt.s32.totalorder %s1385_s24, %s1385_s24 }
  0x3f   :  { %p1392_p2 = por %p1391_p1, %p1390_p0 }
  0x41   :  { %p1393_p3 = pnand %p1392_p2, %p1386_p13 }
  0x43   :  { %1396 = shalt.err (!%p1393_p3)
}
  0x44   :  { %s1501_s9 = smov 256   ;;  %s1502_s25 = smov 16  }
  0x45   :  { %34 = dma.hbm_to_vmem [thread:$0]  %s1723_s0, 512, %s29_s15, [#allocation3], %s1501_s9, %s1501_s9, %s1502_s25  }
  0x46   :  { %s1503_s29 = smov [#allocation7]   ;;  %s1504_s5 = smov [#allocation10]  }
  0x47   :  { %s54_s30 = sshll.u32 %s1503_s29, 4  ;;  %s82_s23 = sshll.u32 %s1504_s5, 4  ;;  %s55_s30 = int_to_ptr.vmem [resolvable:$true] %s54_s30  ;;  %s1638_s23 = int_to_ptr.vmem [resolvable:$true] %s82_s23 }
  0x48   :  { %s1397_s1 = scalar_lea.hbm %s1726_s3, 2048 }
  0x49   :  { %p1398_p4 = scmp.ne.s32.totalorder %s1726_s3, %s1397_s1  ;;  %p1401_p5 = scmp.lt.u32.totalorder %s1397_s1, %s1726_s3 }
  0x4b   :  { %p1403_p6 = pnand %p1401_p5, %p1398_p4 }
  0x4d   :  { %1406 = shalt.err (!%p1403_p6)
}
  0x4e   :  { %s1407_s0 = scalar_lea.vmem %s55_s30, 2048  ;;  %p1412_p8 = scmp.lt.s32.totalorder %s55_s30, %s55_s30 }
  0x4f   :  { %p1408_p7 = scmp.ne.s32.totalorder %s55_s30, %s1407_s0  ;;  %p1413_p9 = scmp.lt.s32.totalorder %s1407_s0, %s1407_s0 }
  0x51   :  { %p1414_p10 = por %p1413_p9, %p1412_p8 }
  0x53   :  { %p1415_p11 = pnand %p1414_p10, %p1408_p7 }
  0x55   :  { %1418 = shalt.err (!%p1415_p11)
}
  0x56   :  { %60 = dma.hbm_to_vmem [thread:$0]  %s1726_s3, 2048, %s55_s30, [#allocation6], %s1496_s18, %s1496_s18, %s1497_s19  }
  0x57   :  { %s1419_s28 = scalar_lea.hbm %s1730_s7, 2048 }
  0x58   :  { %p1420_p12 = scmp.ne.s32.totalorder %s1730_s7, %s1419_s28  ;;  %p1423_p13 = scmp.lt.u32.totalorder %s1419_s28, %s1730_s7 }
  0x5a   :  { %p1425_p0 = pnand %p1423_p13, %p1420_p12 }
  0x5c   :  { %1428 = shalt.err (!%p1425_p0)
}
  0x5d   :  { %s1429_s1 = scalar_lea.vmem %s1638_s23, 2048  ;;  %p1434_p2 = scmp.lt.s32.totalorder %s1638_s23, %s1638_s23 }
  0x5e   :  { %p1430_p1 = scmp.ne.s32.totalorder %s1638_s23, %s1429_s1  ;;  %p1435_p3 = scmp.lt.s32.totalorder %s1429_s1, %s1429_s1 }
  0x60   :  { %p1436_p4 = por %p1435_p3, %p1434_p2 }
  0x62   :  { %p1437_p5 = pnand %p1436_p4, %p1430_p1 }
  0x64   :  { %1440 = shalt.err (!%p1437_p5)
}
  0x65   :  { %88 = dma.hbm_to_vmem [thread:$0]  %s1730_s7, 2048, %s1638_s23, [#allocation9], %s1496_s18, %s1496_s18, %s1497_s19  }
  0x66   :  { %s1505_s26 = smov [#allocation13]   ;;  %s1441_s0 = scalar_lea.hbm %s1734_s11, 4096 }
  0x67   :  { %s110_s17 = sshll.u32 %s1505_s26, 4  ;;  %p1442_p6 = scmp.ne.s32.totalorder %s1734_s11, %s1441_s0  ;;  %s111_s17 = int_to_ptr.vmem [resolvable:$true] %s110_s17 }
  0x68   :  { %p1445_p7 = scmp.lt.u32.totalorder %s1441_s0, %s1734_s11 }
  0x6a   :  { %p1447_p8 = pnand %p1445_p7, %p1442_p6 }
  0x6c   :  { %1450 = shalt.err (!%p1447_p8)
}
  0x6d   :  { %s1451_s28 = scalar_lea.vmem %s111_s17, 4096  ;;  %p1456_p10 = scmp.lt.s32.totalorder %s111_s17, %s111_s17 }
  0x6e   :  { %p1452_p9 = scmp.ne.s32.totalorder %s111_s17, %s1451_s28  ;;  %p1457_p11 = scmp.lt.s32.totalorder %s1451_s28, %s1451_s28 }
  0x70   :  { %p1458_p12 = por %p1457_p11, %p1456_p10 }
  0x72   :  { %p1459_p13 = pnand %p1458_p12, %p1452_p9 }
  0x74   :  { %1462 = shalt.err (!%p1459_p13)
}
  0x75   :  { %116 = dma.hbm_to_vmem [thread:$0]  %s1734_s11, 4096, %s111_s17, [#allocation12], %s1501_s9, %s1501_s9, %s1502_s25  }
  0x76   :  { %1485 = dma.done.wait [#allocation3], 512  }
  0x77   :  { %1486 = vsyncadd [#allocation3], 4294966784 }
  0x78   :  { %1487 = dma.done.wait [#allocation6], 6144  }
  0x79   :  { %1488 = vsyncadd [#allocation6], 4294961152 }
  0x7a   :  { %1489 = dma.done.wait [#allocation9], 4096  }
  0x7b   :  { %1490 = vsyncadd [#allocation9], 4294963200 }
  0x7c   :  { %1491 = dma.done.wait [#allocation12], 6144  }
  0x7d   :  { %1492 = vsyncadd [#allocation12], 4294961152  ;;  %v160_v0 = vld [vmem:[#allocation5 + $0x80] sm:$0xff]  ;;  %v161_v1 = vld [vmem:[#allocation5 + $0x88] sm:$0xff] }
  0x7e   :  { %v144_v2 = vld [vmem:[#allocation5] sm:$0xff]  ;;  %v1076_v3 = vpack.c.bf16 %v161_v1, %v160_v0  ;;  %v145_v4 = vld [vmem:[#allocation5 + $0x8] sm:$0xff]  ;;  %v162_v5 = vld [vmem:[#allocation5 + $0x90] sm:$0xff] }
  0x7f   :  { %v163_v6 = vld [vmem:[#allocation5 + $0x98] sm:$0xff]  ;;  %v1078_v7 = vpack.c.bf16 %v145_v4, %v144_v2  ;;  %v146_v9 = vld [vmem:[#allocation5 + $0x10] sm:$0xff]  ;;  %v164_v11 = vld [vmem:[#allocation5 + $0xa0] sm:$0xff] }
  0x80   :  { %v1080_v8 = vpack.c.bf16 %v163_v6, %v162_v5  ;;  %v147_v10 = vld [vmem:[#allocation5 + $0x18] sm:$0xff]  ;;  %1077 = vmatprep.subr.bf16.mxu0 %v1076_v3  ;;  %v165_v12 = vld [vmem:[#allocation5 + $0xa8] sm:$0xff]  ;;  %v148_v15 = vld [vmem:[#allocation5 + $0x20] sm:$0xff] }
  0x81   :  { %1079 = vmatpush3.bf16.msra.mxu0 %v1078_v7  ;;  %v1082_v13 = vpack.c.bf16 %v147_v10, %v146_v9  ;;  %v1084_v14 = vpack.c.bf16 %v165_v12, %v164_v11  ;;  %v149_v16 = vld [vmem:[#allocation5 + $0x28] sm:$0xff]  ;;  %v166_v17 = vld [vmem:[#allocation5 + $0xb0] sm:$0xff]  ;;  %v167_v18 = vld [vmem:[#allocation5 + $0xb8] sm:$0xff] }
  0x82   :  { %1081 = vmatprep.subr.bf16.mxu0 %v1080_v8  ;;  %v1086_v19 = vpack.c.bf16 %v149_v16, %v148_v15  ;;  %v1088_v20 = vpack.c.bf16 %v167_v18, %v166_v17  ;;  %v150_v21 = vld [vmem:[#allocation5 + $0x30] sm:$0xff]  ;;  %v151_v22 = vld [vmem:[#allocation5 + $0x38] sm:$0xff]  ;;  %v168_v23 = vld [vmem:[#allocation5 + $0xc0] sm:$0xff] }
  0x83   :  { %v169_v24 = vld [vmem:[#allocation5 + $0xc8] sm:$0xff]  ;;  %v152_v26 = vld [vmem:[#allocation5 + $0x40] sm:$0xff]  ;;  %v1090_v27 = vpack.c.bf16 %v151_v22, %v150_v21  ;;  %v262_v30 = vld [vmem:[#allocation7 + $0x10] sm:$0xff] }
  0x84   :  { %v141_v25 = vld [vmem:[#allocation2 + $0x8] sm:$0xff]  ;;  %v260_v28 = vld [vmem:[#allocation7] sm:$0xff]  ;;  %v1092_v31 = vpack.c.bf16 %v169_v24, %v168_v23  ;;  %v170_v33 = vld [vmem:[#allocation5 + $0xd0] sm:$0xff] }
  0x85   :  { %1083 = vmatpush3.bf16.msra.mxu0 %v1082_v13  ;;  %247 = vmatprep.mubr.f32.mxu0 %v141_v25  ;;  %v261_v29 = vld [vmem:[#allocation7 + $0x8] sm:$0xff]  ;;  %v263_v35 = vld [vmem:[#allocation7 + $0x18] sm:$0xff]  ;;  %v264_v38 = vld [vmem:[#allocation7 + $0x20] sm:$0xff] }
  0x86   :  { %1085 = vmatprep.subr.bf16.mxu0 %v1084_v14  ;;  %v153_v32 = vld [vmem:[#allocation5 + $0x48] sm:$0xff]  ;;  %v1108_v34 = vpack.c.bf16 %v261_v29, %v260_v28  ;;  %v171_v36 = vld [vmem:[#allocation5 + $0xd8] sm:$0xff]  ;;  %v1112_v37 = vpack.c.bf16 %v263_v35, %v262_v30  ;;  %v154_v42 = vld [vmem:[#allocation5 + $0x50] sm:$0xff] }
  0x87   :  { %v265_v39 = vld [vmem:[#allocation7 + $0x28] sm:$0xff]  ;;  %v1094_v40 = vpack.c.bf16 %v153_v32, %v152_v26  ;;  %v1096_v41 = vpack.c.bf16 %v171_v36, %v170_v33  ;;  %v155_v43 = vld [vmem:[#allocation5 + $0x58] sm:$0xff]  ;;  %v172_v45 = vld [vmem:[#allocation5 + $0xe0] sm:$0xff] }
  0x88   :  { %1109 = vmatprep.subr.bf16.mxu1 %v1108_v34  ;;  %v1116_v44 = vpack.c.bf16 %v265_v39, %v264_v38  ;;  %v173_v46 = vld [vmem:[#allocation5 + $0xe8] sm:$0xff]  ;;  %v1098_v47 = vpack.c.bf16 %v155_v43, %v154_v42  ;;  %v156_v49 = vld [vmem:[#allocation5 + $0x60] sm:$0xff]  ;;  %v174_v51 = vld [vmem:[#allocation5 + $0xf0] sm:$0xff] }
  0x89   :  { %1087 = vmatpush3.bf16.msra.mxu0 %v1086_v19  ;;  %1111 = vmatpush3.bf16.msra.mxu1 %v1108_v34  ;;  %v1100_v48 = vpack.c.bf16 %v173_v46, %v172_v45  ;;  %v157_v50 = vld [vmem:[#allocation5 + $0x68] sm:$0xff]  ;;  %v175_v52 = vld [vmem:[#allocation5 + $0xf8] sm:$0xff]  ;;  %v158_v55 = vld [vmem:[#allocation5 + $0x70] sm:$0xff] }
  0x8a   :  { %1089 = vmatprep.subr.bf16.mxu0 %v1088_v20  ;;  %1113 = vmatprep.subr.bf16.mxu1 %v1112_v37  ;;  %v1102_v53 = vpack.c.bf16 %v157_v50, %v156_v49  ;;  %v1104_v54 = vpack.c.bf16 %v175_v52, %v174_v51  ;;  %v159_v56 = vld [vmem:[#allocation5 + $0x78] sm:$0xff]  ;;  %v140_v58 = vld [vmem:[#allocation2] sm:$0xff]  ;;  %v142_v60 = vld [vmem:[#allocation2 + $0x10] sm:$0xff] }
  0x8b   :  { %v1106_v57 = vpack.c.bf16 %v159_v56, %v158_v55  ;;  %v143_v59 = vld [vmem:[#allocation2 + $0x18] sm:$0xff]  ;;  %v266_v61 = vld [vmem:[#allocation7 + $0x30] sm:$0xff]  ;;  %v268_v0 = vld [vmem:[#allocation7 + $0x40] sm:$0xff] }
  0x8c   :  { %v267_v62 = vld [vmem:[#allocation7 + $0x38] sm:$0xff]  ;;  %v269_v1 = vld [vmem:[#allocation7 + $0x48] sm:$0xff]  ;;  %v270_v3 = vld [vmem:[#allocation7 + $0x50] sm:$0xff] }
  0x8d   :  { %1091 = vmatpush3.bf16.msra.mxu0 %v1090_v27  ;;  %1115 = vmatpush3.bf16.msra.mxu1 %v1112_v37  ;;  %v1120_v63 = vpack.c.bf16 %v267_v62, %v266_v61  ;;  %v1124_v2 = vpack.c.bf16 %v269_v1, %v268_v0  ;;  %v271_v4 = vld [vmem:[#allocation7 + $0x58] sm:$0xff]  ;;  %v272_v6 = vld [vmem:[#allocation7 + $0x60] sm:$0xff]  ;;  %v273_v7 = vld [vmem:[#allocation7 + $0x68] sm:$0xff] }
  0x8e   :  { %1093 = vmatprep.subr.bf16.mxu0 %v1092_v31  ;;  %1117 = vmatprep.subr.bf16.mxu1 %v1116_v44  ;;  %v1128_v5 = vpack.c.bf16 %v271_v4, %v270_v3  ;;  %v274_v8 = vld [vmem:[#allocation7 + $0x70] sm:$0xff]  ;;  %v1132_v9 = vpack.c.bf16 %v273_v7, %v272_v6  ;;  %v275_v10 = vld [vmem:[#allocation7 + $0x78] sm:$0xff]  ;;  %v360_v12 = vld [vmem:[#allocation8] sm:$0xff] }
  0x8f   :  { %v1136_v11 = vpack.c.bf16 %v275_v10, %v274_v8  ;;  %v361_v13 = vld [vmem:[#allocation8 + $0x8] sm:$0xff]  ;;  %v362_v14 = vld [vmem:[#allocation8 + $0x10] sm:$0xff]  ;;  %v363_v16 = vld [vmem:[#allocation8 + $0x18] sm:$0xff] }
  0x90   :  { %v1140_v15 = vpack.c.bf16 %v361_v13, %v360_v12  ;;  %v1144_v17 = vpack.c.bf16 %v363_v16, %v362_v14  ;;  %v364_v18 = vld [vmem:[#allocation8 + $0x20] sm:$0xff]  ;;  %v365_v19 = vld [vmem:[#allocation8 + $0x28] sm:$0xff]  ;;  %v366_v21 = vld [vmem:[#allocation8 + $0x30] sm:$0xff] }
  0x91   :  { %1095 = vmatpush3.bf16.msra.mxu0 %v1094_v40  ;;  %1119 = vmatpush3.bf16.msra.mxu1 %v1116_v44  ;;  %v1148_v20 = vpack.c.bf16 %v365_v19, %v364_v18  ;;  %v367_v22 = vld [vmem:[#allocation8 + $0x38] sm:$0xff]  ;;  %v821_v25 = vld [vmem:[%s1725_s2] ss:$0 sm:$0xff]  ;;  %v369_v36 = vld [vmem:[#allocation8 + $0x48] sm:$0xff] }
  0x92   :  { %1097 = vmatprep.subr.bf16.mxu0 %v1096_v41  ;;  %1121 = vmatprep.subr.bf16.mxu1 %v1120_v63  ;;  %v1152_v23 = vpack.c.bf16 %v367_v22, %v366_v21  ;;  %v368_v35 = vld [vmem:[#allocation8 + $0x40] sm:$0xff]  ;;  %v370_v38 = vld [vmem:[#allocation8 + $0x50] sm:$0xff]  ;;  %v371_v39 = vld [vmem:[#allocation8 + $0x58] sm:$0xff] }
  0x93   :  { %v1156_v37 = vpack.c.bf16 %v369_v36, %v368_v35  ;;  %v1160_v40 = vpack.c.bf16 %v371_v39, %v370_v38  ;;  %v372_v41 = vld [vmem:[#allocation8 + $0x60] sm:$0xff]  ;;  %v373_v42 = vld [vmem:[#allocation8 + $0x68] sm:$0xff]  ;;  %v374_v43 = vld [vmem:[#allocation8 + $0x70] sm:$0xff] }
  0x94   :  { %v1164_v44 = vpack.c.bf16 %v373_v42, %v372_v41  ;;  %v375_v45 = vld [vmem:[#allocation8 + $0x78] sm:$0xff]  ;;  %v462_v49 = vld [vmem:[#allocation10 + $0x10] sm:$0xff]  ;;  %v469_v3 = vld [vmem:[#allocation10 + $0x48] sm:$0xff] }
  0x95   :  { %1099 = vmatpush3.bf16.msra.mxu0 %v1098_v47  ;;  %1123 = vmatpush3.bf16.msra.mxu1 %v1120_v63  ;;  %v1168_v46 = vpack.c.bf16 %v375_v45, %v374_v43  ;;  %v460_v47 = vld [vmem:[#allocation10] sm:$0xff]  ;;  %v463_v51 = vld [vmem:[#allocation10 + $0x18] sm:$0xff]  ;;  %v466_v56 = vld [vmem:[#allocation10 + $0x30] sm:$0xff] }
  0x96   :  { %1101 = vmatprep.subr.bf16.mxu0 %v1100_v48  ;;  %1125 = vmatprep.subr.bf16.mxu1 %v1124_v2  ;;  %v461_v48 = vld [vmem:[#allocation10 + $0x8] sm:$0xff]  ;;  %v1176_v52 = vpack.c.bf16 %v463_v51, %v462_v49  ;;  %v471_v6 = vld [vmem:[#allocation10 + $0x58] sm:$0xff]  ;;  %v472_v8 = vld [vmem:[#allocation10 + $0x60] sm:$0xff] }
  0x97   :  { %v1172_v50 = vpack.c.bf16 %v461_v48, %v460_v47  ;;  %v474_v10 = vld [vmem:[#allocation10 + $0x70] sm:$0xff]  ;;  %v475_v12 = vld [vmem:[#allocation10 + $0x78] sm:$0xff]  ;;  %v560_v14 = vld [vmem:[#allocation11] sm:$0xff] }
  0x98   :  { %v1200_v13 = vpack.c.bf16 %v475_v12, %v474_v10  ;;  %v562_v16 = vld [vmem:[#allocation11 + $0x10] sm:$0xff]  ;;  %v563_v18 = vld [vmem:[#allocation11 + $0x18] sm:$0xff]  ;;  %v565_v21 = vld [vmem:[#allocation11 + $0x28] sm:$0xff] }
  0x99   :  { %1103 = vmatpush3.bf16.msra.mxu0 %v1102_v53  ;;  %1127 = vmatpush3.bf16.msra.mxu1 %v1124_v2  ;;  %v464_v53 = vld [vmem:[#allocation10 + $0x20] sm:$0xff]  ;;  %v1208_v19 = vpack.c.bf16 %v563_v18, %v562_v16  ;;  %v570_v36 = vld [vmem:[#allocation11 + $0x50] sm:$0xff]  ;;  %v575_v43 = vld [vmem:[#allocation11 + $0x78] sm:$0xff] }
  0x9a   :  { %1105 = vmatprep.subr.bf16.mxu0 %v1104_v54  ;;  %1129 = vmatprep.subr.bf16.mxu1 %v1128_v5  ;;  %v465_v54 = vld [vmem:[#allocation10 + $0x28] sm:$0xff]  ;;  %v468_v2 = vld [vmem:[#allocation10 + $0x40] sm:$0xff]  ;;  %v574_v41 = vld [vmem:[#allocation11 + $0x70] sm:$0xff] }
  0x9b   :  { %v1180_v55 = vpack.c.bf16 %v465_v54, %v464_v53  ;;  %v1188_v4 = vpack.c.bf16 %v469_v3, %v468_v2  ;;  %v572_v39 = vld [vmem:[#allocation11 + $0x60] sm:$0xff]  ;;  %v661_v45 = vld [vmem:[#allocation13 + $0x8] sm:$0xff]  ;;  %v662_v49 = vld [vmem:[#allocation13 + $0x10] sm:$0xff] }
  0x9c   :  { %v660_v47 = vld [vmem:[#allocation13] sm:$0xff]  ;;  %v667_v51 = vld [vmem:[#allocation13 + $0x38] sm:$0xff]  ;;  %v674_v3 = vld [vmem:[#allocation13 + $0x70] sm:$0xff] }
  0x9d   :  { %1107 = vmatpush3.bf16.msra.mxu0 %v1106_v57  ;;  %1131 = vmatpush3.bf16.msra.mxu1 %v1128_v5  ;;  %v467_v57 = vld [vmem:[#allocation10 + $0x38] sm:$0xff]  ;;  %v470_v5 = vld [vmem:[#allocation10 + $0x50] sm:$0xff]  ;;  %v664_v54 = vld [vmem:[#allocation13 + $0x20] sm:$0xff] }
  0x9e   :  { %1133 = vmatprep.subr.bf16.mxu1 %v1132_v9  ;;  %1141 = vmatprep.subr.bf16.mxu0 %v1140_v15  ;;  %v1192_v7 = vpack.c.bf16 %v471_v6, %v470_v5  ;;  %v672_v2 = vld [vmem:[#allocation13 + $0x60] sm:$0xff]  ;;  %v679_v5 = vld [vmem:[#allocation13 + $0x98] sm:$0xff]  ;;  %v678_v16 = vld [vmem:[#allocation13 + $0x90] sm:$0xff] }
  0x9f   :  { %v1250_v6 = vpack.c.bf16 %v674_v3, %v672_v2  ;;  %v681_v18 = vld [vmem:[#allocation13 + $0xa8] sm:$0xff] }
  0xa0   :  { %248 = vmatmul.mubr.f32.vlgmr.msra.gmra.mrb[0].mxu0 %v140_v58  ;;  %v1184_v58 = vpack.c.bf16 %v467_v57, %v466_v56  ;;  %v669_v56 = vld [vmem:[#allocation13 + $0x48] sm:$0xff]  ;;  %v671_v57 = vld [vmem:[#allocation13 + $0x58] sm:$0xff] }
  0xa1   :  { %252 = vmatprep.mubr.f32.mxu0 %v143_v59  ;;  %1135 = vmatpush3.bf16.msra.mxu1 %v1132_v9  ;;  %v822_v59 = vld [vmem:[%s1727_s4] ss:$0 sm:$0xff]  ;;  %v473_v9 = vld [vmem:[#allocation10 + $0x68] sm:$0xff] }
  0xa2   :  { %1137 = vmatprep.subr.bf16.mxu1 %v1136_v11  ;;  %1143 = vmatpush3.bf16.msra.mxu0 %v1140_v15  ;;  %v561_v15 = vld [vmem:[#allocation11 + $0x8] sm:$0xff] }
  0xa3   :  { %1145 = vmatprep.subr.bf16.mxu0 %v1144_v17 }
  0xa4   :  { %253 = vmatmul.mubr.f32.gmra.mrb[2].mxu0 %v142_v60 }
  0xa5   :  { %1139 = vmatpush3.bf16.msra.mxu1 %v1136_v11  ;;  %v1196_v11 = vpack.c.bf16 %v473_v9, %v472_v8  ;;  %v824_v8 = vld [vmem:[%s1731_s8] ss:$0 sm:$0xff] }
  0xa6   :  { %1147 = vmatpush3.bf16.msra.mxu0 %v1144_v17  ;;  %1173 = vmatprep.subr.bf16.mxu1 %v1172_v50  ;;  %v1204_v17 = vpack.c.bf16 %v561_v15, %v560_v14  ;;  %v676_v15 = vld [vmem:[#allocation13 + $0x80] sm:$0xff] }
  0xa7   :  { %1149 = vmatprep.subr.bf16.mxu0 %v1148_v20 }
  0xaa   :  { %1151 = vmatpush3.bf16.msra.mxu0 %v1148_v20  ;;  %v564_v20 = vld [vmem:[#allocation11 + $0x20] sm:$0xff] }
  0xab   :  { %1153 = vmatprep.subr.bf16.mxu0 %v1152_v23  ;;  %v1212_v22 = vpack.c.bf16 %v565_v21, %v564_v20  ;;  %v680_v21 = vld [vmem:[#allocation13 + $0xa0] sm:$0xff] }
  0xae   :  { %1155 = vmatpush3.bf16.msra.mxu0 %v1152_v23  ;;  %v566_v23 = vld [vmem:[#allocation11 + $0x30] sm:$0xff] }
  0xaf   :  { %1157 = vmatprep.subr.bf16.mxu0 %v1156_v37 }
  0xb2   :  { %1159 = vmatpush3.bf16.msra.mxu0 %v1156_v37  ;;  %v571_v37 = vld [vmem:[#allocation11 + $0x58] sm:$0xff] }
  0xb3   :  { %1161 = vmatprep.subr.bf16.mxu0 %v1160_v40  ;;  %v1224_v38 = vpack.c.bf16 %v571_v37, %v570_v36  ;;  %v825_v37 = vld [vmem:[%s1733_s10] ss:$0 sm:$0xff]  ;;  %s1507_s10 = smov [#allocation14]  }
  0xb6   :  { %1163 = vmatpush3.bf16.msra.mxu0 %v1160_v40  ;;  %v573_v40 = vld [vmem:[#allocation11 + $0x68] sm:$0xff] }
  0xb7   :  { %1165 = vmatprep.subr.bf16.mxu0 %v1164_v44  ;;  %v1228_v42 = vpack.c.bf16 %v573_v40, %v572_v39 }
  0xba   :  { %1167 = vmatpush3.bf16.msra.mxu0 %v1164_v44  ;;  %v1232_v44 = vpack.c.bf16 %v575_v43, %v574_v41 }
  0xbb   :  { %1169 = vmatprep.subr.bf16.mxu0 %v1168_v46 }
  0xbe   :  { %1171 = vmatpush3.bf16.msra.mxu0 %v1168_v46  ;;  %v663_v46 = vld [vmem:[#allocation13 + $0x18] sm:$0xff] }
  0xbf   :  { %1205 = vmatprep.subr.bf16.mxu0 %v1204_v17  ;;  %v1236_v48 = vpack.c.bf16 %v663_v46, %v661_v45 }
 0x173   :  { %v858_v24 = vpop.f32.mrb[0].mxu0 }
 0x174   :  { %v859_v26 = vpop.f32.mrb[1].mxu0 }
 0x175   :  { %v860_v27 = vadd.f32 %v859_v26, %v858_v24  ;;  %v567_v24 = vld [vmem:[#allocation11 + $0x38] sm:$0xff]  ;;  %v823_v26 = vld [vmem:[%s1729_s6] ss:$0 sm:$0xff] }
 0x177   :  { %v250_v28 = vadd.f32 %v860_v27, %v821_v25  ;;  %v861_v29 = vpop.f32.mrb[2].mxu0 }
 0x178   :  { %v862_v30 = vpop.f32.mrb[3].mxu0 }
 0x179   :  { %v863_v31 = vadd.f32 %v862_v30, %v861_v29  ;;  %1281 = vtanh.f32 %v250_v28 }
 0x17b   :  { %v255_v32 = vadd.f32 %v863_v31, %v821_v25  ;;  %v1216_v25 = vpack.c.bf16 %v567_v24, %v566_v23  ;;  %v685_v24 = vld [vmem:[#allocation13 + $0xc8] sm:$0xff] }
 0x17d   :  { %1283 = vtanh.f32 %v255_v32 }
 0x183   :  { %v1282_v33 = vpop.eup %1281 }
 0x184   :  { %968 = vmatprep.mubr.f32.mxu1 %v1282_v33  ;;  %v568_v33 = vld [vmem:[#allocation11 + $0x40] sm:$0xff] }
 0x187   :  { %v1284_v34 = vpop.eup %1283 }
 0x188   :  { %969 = vmatmul.mubr.f32.vlgmr.msra.gmra.mrb[0].mxu1 %v1284_v34  ;;  %v569_v34 = vld [vmem:[#allocation11 + $0x48] sm:$0xff] }
 0x189   :  { %1175 = vmatpush3.bf16.msra.mxu1 %v1172_v50  ;;  %v1220_v35 = vpack.c.bf16 %v569_v34, %v568_v33  ;;  %v665_v50 = vld [vmem:[#allocation13 + $0x28] sm:$0xff]  ;;  %v688_v34 = vld [vmem:[#allocation13 + $0xe0] sm:$0xff] }
 0x18a   :  { %1177 = vmatprep.subr.bf16.mxu1 %v1176_v52  ;;  %v1240_v53 = vpack.c.bf16 %v667_v51, %v665_v50 }
 0x18d   :  { %1179 = vmatpush3.bf16.msra.mxu1 %v1176_v52  ;;  %v1238_v52 = vpack.c.bf16 %v662_v49, %v660_v47  ;;  %v692_v47 = vld [vmem:[%s1735_s12] sm:$0x3]  ;;  %s806_s12 = sshll.u32 %s1507_s10, 4  ;;  %s807_s12 = int_to_ptr.vmem [resolvable:$true] %s806_s12 }
 0x18e   :  { %1181 = vmatprep.subr.bf16.mxu1 %v1180_v55  ;;  %s1463_s3 = scalar_lea.vmem %s807_s12, 512  ;;  %p1468_p1 = scmp.lt.s32.totalorder %s807_s12, %s807_s12 }
 0x18f   :  { %p1464_p0 = scmp.ne.s32.totalorder %s807_s12, %s1463_s3  ;;  %p1469_p2 = scmp.lt.s32.totalorder %s1463_s3, %s1463_s3 }
 0x191   :  { %1183 = vmatpush3.bf16.msra.mxu1 %v1180_v55  ;;  %v666_v55 = vld [vmem:[#allocation13 + $0x30] sm:$0xff]  ;;  %p1470_p3 = por %p1469_p2, %p1468_p1 }
 0x192   :  { %1185 = vmatprep.subr.bf16.mxu1 %v1184_v58 }
 0x193   :  { %p1471_p4 = pnand %p1470_p3, %p1464_p0 }
 0x195   :  { %1187 = vmatpush3.bf16.msra.mxu1 %v1184_v58  ;;  %v1242_v58 = vpack.c.bf16 %v666_v55, %v664_v54 }
 0x196   :  { %1189 = vmatprep.subr.bf16.mxu1 %v1188_v4 }
 0x199   :  { %1191 = vmatpush3.bf16.msra.mxu1 %v1188_v4  ;;  %v677_v4 = vld [vmem:[#allocation13 + $0x88] sm:$0xff] }
 0x19a   :  { %1193 = vmatprep.subr.bf16.mxu1 %v1192_v7 }
 0x19d   :  { %1195 = vmatpush3.bf16.msra.mxu1 %v1192_v7  ;;  %v1252_v7 = vpack.c.bf16 %v679_v5, %v677_v4 }
 0x19e   :  { %1197 = vmatprep.subr.bf16.mxu1 %v1196_v11 }
 0x1a1   :  { %1199 = vmatpush3.bf16.msra.mxu1 %v1196_v11 }
 0x1a2   :  { %1201 = vmatprep.subr.bf16.mxu1 %v1200_v13 }
 0x1a5   :  { %1203 = vmatpush3.bf16.msra.mxu1 %v1200_v13 }
 0x1a6   :  { %1237 = vmatprep.subr.bf16.mxu1 %v1236_v48 }
 0x25b   :  { %v970_v60 = vpop.f32.mrb[0].mxu1 }
 0x25c   :  { %v355_v61 = vadd.f32 %v970_v60, %v822_v59  ;;  %v349_v62 = vpop.f32.mrb[1].mxu1  ;;  %v668_v60 = vld [vmem:[#allocation13 + $0x40] sm:$0xff] }
 0x25d   :  { %v350_v63 = vadd.f32 %v822_v59, %v349_v62  ;;  %v1244_v59 = vpack.c.bf16 %v671_v57, %v669_v56  ;;  %v673_v62 = vld [vmem:[#allocation13 + $0x68] sm:$0xff] }
 0x25f   :  { %1285 = vtanh.f32 %v350_v63  ;;  %v675_v63 = vld [vmem:[#allocation13 + $0x78] sm:$0xff] }
 0x260   :  { %1287 = vtanh.f32 %v355_v61  ;;  %v670_v61 = vld [vmem:[#allocation13 + $0x50] sm:$0xff] }
 0x269   :  { %v1286_v0 = vpop.eup %1285 }
 0x26a   :  { %v1288_v1 = vpop.eup %1287  ;;  %1003 = vmatprep.mubr.f32.mxu0 %v1286_v0  ;;  %v1246_v0 = vpack.c.bf16 %v670_v61, %v668_v60 }
 0x26b   :  { %1004 = vmatmul.mubr.f32.vlgmr.msra.gmra.mrb[4].mxu0 %v1288_v1  ;;  %v1248_v1 = vpack.c.bf16 %v675_v63, %v673_v62 }
 0x26c   :  { %1207 = vmatpush3.bf16.msra.mxu0 %v1204_v17  ;;  %v1254_v17 = vpack.c.bf16 %v678_v16, %v676_v15 }
 0x26d   :  { %1209 = vmatprep.subr.bf16.mxu0 %v1208_v19 }
 0x270   :  { %1211 = vmatpush3.bf16.msra.mxu0 %v1208_v19  ;;  %v683_v19 = vld [vmem:[#allocation13 + $0xb8] sm:$0xff] }
 0x271   :  { %1213 = vmatprep.subr.bf16.mxu0 %v1212_v22  ;;  %v1256_v20 = vpack.c.bf16 %v683_v19, %v681_v18 }
 0x274   :  { %1215 = vmatpush3.bf16.msra.mxu0 %v1212_v22  ;;  %v682_v22 = vld [vmem:[#allocation13 + $0xb0] sm:$0xff] }
 0x275   :  { %1217 = vmatprep.subr.bf16.mxu0 %v1216_v25  ;;  %v1258_v23 = vpack.c.bf16 %v682_v22, %v680_v21 }
 0x278   :  { %1219 = vmatpush3.bf16.msra.mxu0 %v1216_v25  ;;  %v687_v25 = vld [vmem:[#allocation13 + $0xd8] sm:$0xff] }
 0x279   :  { %1221 = vmatprep.subr.bf16.mxu0 %v1220_v35 }
 0x27c   :  { %1223 = vmatpush3.bf16.msra.mxu0 %v1220_v35  ;;  %v690_v35 = vld [vmem:[#allocation13 + $0xf0] sm:$0xff] }
 0x27d   :  { %1225 = vmatprep.subr.bf16.mxu0 %v1224_v38  ;;  %v1266_v36 = vpack.c.bf16 %v690_v35, %v688_v34 }
 0x280   :  { %1227 = vmatpush3.bf16.msra.mxu0 %v1224_v38 }
 0x281   :  { %1229 = vmatprep.subr.bf16.mxu0 %v1228_v42 }
 0x284   :  { %1231 = vmatpush3.bf16.msra.mxu0 %v1228_v42 }
 0x285   :  { %1233 = vmatprep.subr.bf16.mxu0 %v1232_v44 }
 0x288   :  { %1235 = vmatpush3.bf16.msra.mxu0 %v1232_v44  ;;  %v694_v44 = vlaneseq }
 0x28a   :  { %v695_v45 = vshrl.u32 %v694_v44, 7 }
 0x28c   :  { %v696_v46 = vsub.s32 0, %v695_v45  ;;  %v700_v48 = vsub.s32 1, %v695_v45 }
 0x28e   :  { %v697_v49 = vrot.slane %v692_v47, %v696_v46  ;;  %v701_v50 = vrot.slane %v692_v47, %v700_v48 }
 0x33e   :  { %v1005_v27 = vpop.f32.mrb[4].mxu0 }
 0x33f   :  { %v455_v28 = vadd.f32 %v1005_v27, %v823_v26  ;;  %v449_v29 = vpop.f32.mrb[5].mxu0  ;;  %v1260_v27 = vpack.c.bf16 %v687_v25, %v685_v24 }
 0x340   :  { %v450_v30 = vadd.f32 %v823_v26, %v449_v29  ;;  %v684_v26 = vld [vmem:[#allocation13 + $0xc0] sm:$0xff]  ;;  %v689_v29 = vld [vmem:[#allocation13 + $0xe8] sm:$0xff] }
 0x342   :  { %1289 = vtanh.f32 %v450_v30  ;;  %v691_v30 = vld [vmem:[#allocation13 + $0xf8] sm:$0xff] }
 0x343   :  { %1291 = vtanh.f32 %v455_v28  ;;  %v686_v28 = vld [vmem:[#allocation13 + $0xd0] sm:$0xff]  ;;  %v1264_v33 = vpack.c.bf16 %v691_v30, %v689_v29 }
 0x34c   :  { %v1290_v31 = vpop.eup %1289 }
 0x34d   :  { %v1292_v32 = vpop.eup %1291  ;;  %1038 = vmatprep.mubr.f32.mxu1 %v1290_v31  ;;  %v1506_v31 = vmov 0.0  }
 0x34e   :  { %1039 = vmatmul.mubr.f32.vlgmr.msra.gmra.mrb[2].mxu1 %v1292_v32  ;;  %v1262_v32 = vpack.c.bf16 %v686_v28, %v684_v26 }
 0x34f   :  { %1239 = vmatpush1.bf16.msra.mxu1 %v1238_v52  ;;  %768 = vmatprep.mubr.f32.mxu1 %v1506_v31 }
 0x350   :  { %1241 = vmatprep.subr.bf16.mxu1 %v1240_v53 }
 0x353   :  { %1243 = vmatpush1.bf16.msra.mxu1 %v1242_v58 }
 0x354   :  { %1245 = vmatprep.subr.bf16.mxu1 %v1244_v59 }
 0x357   :  { %1247 = vmatpush1.bf16.msra.mxu1 %v1246_v0 }
 0x358   :  { %1249 = vmatprep.subr.bf16.mxu1 %v1248_v1 }
 0x35b   :  { %1251 = vmatpush1.bf16.msra.mxu1 %v1250_v6 }
 0x35c   :  { %1253 = vmatprep.subr.bf16.mxu1 %v1252_v7 }
 0x35f   :  { %1255 = vmatpush1.bf16.msra.mxu1 %v1254_v17 }
 0x360   :  { %1257 = vmatprep.subr.bf16.mxu1 %v1256_v20 }
 0x363   :  { %1259 = vmatpush1.bf16.msra.mxu1 %v1258_v23 }
 0x364   :  { %1261 = vmatprep.subr.bf16.mxu1 %v1260_v27 }
 0x367   :  { %1263 = vmatpush1.bf16.msra.mxu1 %v1262_v32 }
 0x368   :  { %1265 = vmatprep.subr.bf16.mxu1 %v1264_v33 }
 0x36b   :  { %1267 = vmatpush1.bf16.msra.mxu1 %v1266_v36 }
 0x421   :  { %v1040_v9 = vpop.f32.mrb[2].mxu1 }
 0x422   :  { %v555_v10 = vadd.f32 %v1040_v9, %v824_v8  ;;  %v549_v11 = vpop.f32.mrb[3].mxu1 }
 0x423   :  { %v550_v12 = vadd.f32 %v824_v8, %v549_v11 }
 0x425   :  { %1293 = vtanh.f32 %v550_v12 }
 0x426   :  { %1295 = vtanh.f32 %v555_v10 }
 0x42f   :  { %v1294_v13 = vpop.eup %1293 }
 0x430   :  { %v1296_v14 = vpop.eup %1295  ;;  %1073 = vmatprep.mubr.f32.mxu0 %v1294_v13 }
 0x431   :  { %1074 = vmatmul.mubr.f32.vlgmr.msra.gmra.mrb[6].mxu0 %v1296_v14 }
 0x504   :  { %v1075_v38 = vpop.f32.mrb[6].mxu0 }
 0x505   :  { %v649_v39 = vpop.f32.mrb[7].mxu0  ;;  %v655_v41 = vadd.f32 %v1075_v38, %v825_v37 }
 0x506   :  { %v650_v40 = vadd.f32 %v825_v37, %v649_v39 }
 0x508   :  { %1297 = vtanh.f32 %v650_v40 }
 0x509   :  { %1299 = vtanh.f32 %v655_v41 }
 0x512   :  { %v1298_v42 = vpop.eup %1297 }
 0x513   :  { %769 = vmatmul.mubr.f32.vlgmr.msra.gmra.mrb[4].mxu1 %v1298_v42  ;;  %v1300_v43 = vpop.eup %1299 }
 0x514   :  { %774 = vmatprep.mubr.f32.mxu1 %v1506_v31 }
 0x517   :  { %775 = vmatmul.mubr.f32.gmra.mrb[6].mxu1 %v1300_v43 }
 0x5e6   :  { %v770_v51 = vpop.f32.mrb[4].mxu1 }
 0x5e7   :  { %v771_v52 = vadd.f32 %v770_v51, %v697_v49  ;;  %v772_v53 = vpop.f32.mrb[5].mxu1 }
 0x5e8   :  { %v773_v54 = vadd.f32 %v772_v53, %v701_v50 }
 0x5e9   :  { %v781_v55 = vmul.f32 0.5, %v771_v52 }
 0x5ea   :  { %v782_v56 = vmul.f32 0.5, %v773_v54  ;;  %v776_v57 = vpop.f32.mrb[6].mxu1 }
 0x5eb   :  { %1301 = vtanh.f32 %v781_v55  ;;  %v777_v58 = vadd.f32 %v776_v57, %v697_v49  ;;  %v778_v59 = vpop.f32.mrb[7].mxu1 }
 0x5ec   :  { %1303 = vtanh.f32 %v782_v56  ;;  %v779_v60 = vadd.f32 %v778_v59, %v701_v50 }
 0x5ed   :  { %v783_v61 = vmul.f32 0.5, %v777_v58 }
 0x5ee   :  { %v784_v62 = vmul.f32 0.5, %v779_v60 }
 0x5ef   :  { %1305 = vtanh.f32 %v783_v61 }
 0x5f0   :  { %1307 = vtanh.f32 %v784_v62 }
 0x5f5   :  { %v1302_v63 = vpop.eup %1301 }
 0x5f6   :  { %v1304_v0 = vpop.eup %1303  ;;  %v789_v1 = vmul.f32 0.5, %v1302_v63 }
 0x5f7   :  { %v790_v2 = vmul.f32 0.5, %v1304_v0 }
 0x5f8   :  { %v793_v3 = vadd.f32 0.5, %v789_v1 }
 0x5f9   :  { %v1306_v4 = vpop.eup %1305  ;;  %v794_v5 = vadd.f32 0.5, %v790_v2 }
 0x5fa   :  { %v1308_v6 = vpop.eup %1307  ;;  %797 = vst [vmem:[#allocation14] sm:$0xff] %v793_v3  ;;  %v791_v7 = vmul.f32 0.5, %v1306_v4 }
 0x5fb   :  { %798 = vst [vmem:[#allocation14 + $0x8] sm:$0xff] %v794_v5  ;;  %v792_v8 = vmul.f32 0.5, %v1308_v6 }
 0x5fc   :  { %v795_v9 = vadd.f32 0.5, %v791_v7 }
 0x5fd   :  { %v796_v10 = vadd.f32 0.5, %v792_v8 }
 0x5fe   :  { %799 = vst [vmem:[#allocation14 + $0x10] sm:$0xff] %v795_v9 }
 0x5ff   :  { %800 = vst [vmem:[#allocation14 + $0x18] sm:$0xff] %v796_v10 }
 0x600   :  { %1474 = shalt.err (!%p1471_p4)
}
 0x601   :  { %s1475_s17 = scalar_lea.hbm %s1736_s13, 512 }
 0x602   :  { %p1476_p5 = scmp.ne.s32.totalorder %s1736_s13, %s1475_s17  ;;  %p1479_p6 = scmp.lt.u32.totalorder %s1475_s17, %s1736_s13 }
 0x604   :  { %p1481_p7 = pnand %p1479_p6, %p1476_p5 }
 0x606   :  { %1484 = shalt.err (!%p1481_p7)
}
 0x607   :  { %812 = dma.vmem_to_hbm [thread:$0]  %s807_s12, 512, %s1736_s13, [#allocation4], %s1501_s9, %s1501_s9, %s1502_s25  }
 0x608   :  { %1493 = dma.done.wait [#allocation4], 512  }
 0x609   :  { %1494 = vsyncadd [#allocation4], 4294966784 }
 0x60a   :  { %816 = vsyncpa [#allocation3], 1 }
 0x60b   :  { %817 = vsyncpa [#allocation6], 1 }
 0x60c   :  { %818 = vsyncpa [#allocation9], 1 }
 0x60d   :  { %819 = vsyncpa [#allocation12], 1 }
 0x60e   :  { %820 = vsyncpa [#allocation4], 1 }

// kernel: tpu_custom_call.1
= control target key start
LH: loop header
LB: loop body
LE: loop exit
PB: predicated region body
PF: predicated region fallthrough
CT: control target
= control target key end

     0   :  { %18 = vsyncpa [#allocation3], 0  ;;  %s1723_s0 = inlined_call_operand.hbm [shape: f32[16,256], index: 0, kind: input, shape index: {}]   ;;  %s1724_s1 = inlined_call_operand.hbm [shape: f32[256,128], index: 1, kind: input, shape index: {}]   ;;  %s1725_s2 = inlined_call_operand.vmem [shape: f32[1,128], index: 2, kind: input, shape index: {}]   ;;  %s1726_s3 = inlined_call_operand.hbm [shape: f32[128,128], index: 3, kind: input, shape index: {}]   ;;  %s1727_s4 = inlined_call_operand.vmem [shape: f32[1,128], index: 4, kind: input, shape index: {}]   ;;  %s1728_s5 = inlined_call_operand.hbm [shape: f32[128,128], index: 5, kind: input, shape index: {}]   ;;  %s1729_s6 = inlined_call_operand.vmem [shape: f32[1,128], index: 6, kind: input, shape index: {}]   ;;  %s1730_s7 = inlined_call_operand.hbm [shape: f32[128,128], index: 7, kind: input, shape index: {}]   ;;  %s1731_s8 = inlined_call_operand.vmem [shape: f32[1,128], index: 8, kind: input, shape index: {}]   ;;  %s1732_s9 = inlined_call_operand.hbm [shape: f32[128,128], index: 9, kind: input, shape index: {}]   ;;  %s1733_s10 = inlined_call_operand.vmem [shape: f32[1,128], index: 10, kind: input, shape index: {}]   ;;  %s1734_s11 = inlined_call_operand.hbm [shape: f32[128,256], index: 11, kind: input, shape index: {}]   ;;  %s1735_s12 = inlined_call_operand.vmem [shape: f32[1,256], index: 12, kind: input, shape index: {}]   ;;  %s1736_s13 = inlined_call_operand.hbm [shape: f32[16,256], index: 13, kind: output, shape index: {}]  }
   0x1   :  { %19 = vsyncpa [#allocation6], 0 }
   0x2   :  { %20 = vsyncpa [#allocation9], 0 }
   0x3   :  { %21 = vsyncpa [#allocation12], 0 }
   0x4   :  { %22 = vsyncpa [#allocation4], 0  ;;  %s1495_s25 = smov [#allocation5]   ;;  %s1309_s29 = scalar_lea.hbm %s1724_s1, 4096 }
   0x5   :  { %s40_s26 = sshll.u32 %s1495_s25, 4  ;;  %p1310_p0 = scmp.ne.s32.totalorder %s1724_s1, %s1309_s29  ;;  %s41_s26 = int_to_ptr.vmem [resolvable:$true] %s40_s26 }
   0x6   :  { %p1313_p1 = scmp.lt.u32.totalorder %s1309_s29, %s1724_s1 }
   0x8   :  { %p1315_p2 = pnand %p1313_p1, %p1310_p0 }
   0xa   :  { %1318 = shalt.err (!%p1315_p2)
}
   0xb   :  { %s1319_s17 = scalar_lea.vmem %s41_s26, 4096  ;;  %p1324_p4 = scmp.lt.s32.totalorder %s41_s26, %s41_s26 }
   0xc   :  { %p1320_p3 = scmp.ne.s32.totalorder %s41_s26, %s1319_s17  ;;  %p1325_p5 = scmp.lt.s32.totalorder %s1319_s17, %s1319_s17 }
   0xe   :  { %p1326_p6 = por %p1325_p5, %p1324_p4 }
  0x10   :  { %p1327_p7 = pnand %p1326_p6, %p1320_p3 }
  0x12   :  { %1330 = shalt.err (!%p1327_p7)
}
  0x13   :  { %s1496_s18 = smov 128   ;;  %s1497_s19 = smov 8  }
  0x14   :  { %46 = dma.hbm_to_vmem [thread:$0]  %s1724_s1, 4096, %s41_s26, [#allocation6], %s1496_s18, %s1496_s18, %s1497_s19  }
  0x15   :  { %s1498_s22 = smov [#allocation8]   ;;  %s1499_s24 = smov [#allocation11]  }
  0x16   :  { %s68_s23 = sshll.u32 %s1498_s22, 4  ;;  %s96_s25 = sshll.u32 %s1499_s24, 4  ;;  %s69_s23 = int_to_ptr.vmem [resolvable:$true] %s68_s23  ;;  %s97_s25 = int_to_ptr.vmem [resolvable:$true] %s96_s25 }
  0x17   :  { %s1331_s29 = scalar_lea.hbm %s1728_s5, 2048 }
  0x18   :  { %p1332_p8 = scmp.ne.s32.totalorder %s1728_s5, %s1331_s29  ;;  %p1335_p9 = scmp.lt.u32.totalorder %s1331_s29, %s1728_s5 }
  0x1a   :  { %p1337_p10 = pnand %p1335_p9, %p1332_p8 }
  0x1c   :  { %1340 = shalt.err (!%p1337_p10)
}
  0x1d   :  { %s1341_s1 = scalar_lea.vmem %s69_s23, 2048  ;;  %p1346_p12 = scmp.lt.s32.totalorder %s69_s23, %s69_s23 }
  0x1e   :  { %p1342_p11 = scmp.ne.s32.totalorder %s69_s23, %s1341_s1  ;;  %p1347_p13 = scmp.lt.s32.totalorder %s1341_s1, %s1341_s1 }
  0x20   :  { %p1348_p0 = por %p1347_p13, %p1346_p12 }
  0x22   :  { %p1349_p1 = pnand %p1348_p0, %p1342_p11 }
  0x24   :  { %1352 = shalt.err (!%p1349_p1)
}
  0x25   :  { %74 = dma.hbm_to_vmem [thread:$0]  %s1728_s5, 2048, %s69_s23, [#allocation9], %s1496_s18, %s1496_s18, %s1497_s19  }
  0x26   :  { %s1353_s22 = scalar_lea.hbm %s1732_s9, 2048 }
  0x27   :  { %p1354_p2 = scmp.ne.s32.totalorder %s1732_s9, %s1353_s22  ;;  %p1357_p3 = scmp.lt.u32.totalorder %s1353_s22, %s1732_s9 }
  0x29   :  { %p1359_p4 = pnand %p1357_p3, %p1354_p2 }
  0x2b   :  { %1362 = shalt.err (!%p1359_p4)
}
  0x2c   :  { %s1363_s30 = scalar_lea.vmem %s97_s25, 2048  ;;  %p1368_p6 = scmp.lt.s32.totalorder %s97_s25, %s97_s25 }
  0x2d   :  { %p1364_p5 = scmp.ne.s32.totalorder %s97_s25, %s1363_s30  ;;  %p1369_p7 = scmp.lt.s32.totalorder %s1363_s30, %s1363_s30 }
  0x2f   :  { %p1370_p8 = por %p1369_p7, %p1368_p6 }
  0x31   :  { %p1371_p9 = pnand %p1370_p8, %p1364_p5 }
  0x33   :  { %1374 = shalt.err (!%p1371_p9)
}
  0x34   :  { %102 = dma.hbm_to_vmem [thread:$0]  %s1732_s9, 2048, %s97_s25, [#allocation12], %s1496_s18, %s1496_s18, %s1497_s19  }
  0x35   :  { %s1500_s14 = smov [#allocation2]   ;;  %s1375_s26 = scalar_lea.hbm %s1723_s0, 512 }
  0x36   :  { %s28_s15 = sshll.u32 %s1500_s14, 4  ;;  %p1376_p10 = scmp.ne.s32.totalorder %s1723_s0, %s1375_s26  ;;  %s29_s15 = int_to_ptr.vmem [resolvable:$true] %s28_s15 }
  0x37   :  { %p1379_p11 = scmp.lt.u32.totalorder %s1375_s26, %s1723_s0 }
  0x39   :  { %p1381_p12 = pnand %p1379_p11, %p1376_p10 }
  0x3b   :  { %1384 = shalt.err (!%p1381_p12)
}
  0x3c   :  { %s1385_s24 = scalar_lea.vmem %s29_s15, 512  ;;  %p1390_p0 = scmp.lt.s32.totalorder %s29_s15, %s29_s15 }
  0x3d   :  { %p1386_p13 = scmp.ne.s32.totalorder %s29_s15, %s1385_s24  ;;  %p1391_p1 = scmp.lt.s32.totalorder %s1385_s24, %s1385_s24 }
  0x3f   :  { %p1392_p2 = por %p1391_p1, %p1390_p0 }
  0x41   :  { %p1393_p3 = pnand %p1392_p2, %p1386_p13 }
  0x43   :  { %1396 = shalt.err (!%p1393_p3)
}
  0x44   :  { %s1501_s9 = smov 256   ;;  %s1502_s25 = smov 16  }
  0x45   :  { %34 = dma.hbm_to_vmem [thread:$0]  %s1723_s0, 512, %s29_s15, [#allocation3], %s1501_s9, %s1501_s9, %s1502_s25  }
  0x46   :  { %s1503_s29 = smov [#allocation7]   ;;  %s1504_s5 = smov [#allocation10]  }
  0x47   :  { %s54_s30 = sshll.u32 %s1503_s29, 4  ;;  %s82_s23 = sshll.u32 %s1504_s5, 4  ;;  %s55_s30 = int_to_ptr.vmem [resolvable:$true] %s54_s30  ;;  %s1638_s23 = int_to_ptr.vmem [resolvable:$true] %s82_s23 }
  0x48   :  { %s1397_s1 = scalar_lea.hbm %s1726_s3, 2048 }
  0x49   :  { %p1398_p4 = scmp.ne.s32.totalorder %s1726_s3, %s1397_s1  ;;  %p1401_p5 = scmp.lt.u32.totalorder %s1397_s1, %s1726_s3 }
  0x4b   :  { %p1403_p6 = pnand %p1401_p5, %p1398_p4 }
  0x4d   :  { %1406 = shalt.err (!%p1403_p6)
}
  0x4e   :  { %s1407_s0 = scalar_lea.vmem %s55_s30, 2048  ;;  %p1412_p8 = scmp.lt.s32.totalorder %s55_s30, %s55_s30 }
  0x4f   :  { %p1408_p7 = scmp.ne.s32.totalorder %s55_s30, %s1407_s0  ;;  %p1413_p9 = scmp.lt.s32.totalorder %s1407_s0, %s1407_s0 }
  0x51   :  { %p1414_p10 = por %p1413_p9, %p1412_p8 }
  0x53   :  { %p1415_p11 = pnand %p1414_p10, %p1408_p7 }
  0x55   :  { %1418 = shalt.err (!%p1415_p11)
}
  0x56   :  { %60 = dma.hbm_to_vmem [thread:$0]  %s1726_s3, 2048, %s55_s30, [#allocation6], %s1496_s18, %s1496_s18, %s1497_s19  }
  0x57   :  { %s1419_s28 = scalar_lea.hbm %s1730_s7, 2048 }
  0x58   :  { %p1420_p12 = scmp.ne.s32.totalorder %s1730_s7, %s1419_s28  ;;  %p1423_p13 = scmp.lt.u32.totalorder %s1419_s28, %s1730_s7 }
  0x5a   :  { %p1425_p0 = pnand %p1423_p13, %p1420_p12 }
  0x5c   :  { %1428 = shalt.err (!%p1425_p0)
}
  0x5d   :  { %s1429_s1 = scalar_lea.vmem %s1638_s23, 2048  ;;  %p1434_p2 = scmp.lt.s32.totalorder %s1638_s23, %s1638_s23 }
  0x5e   :  { %p1430_p1 = scmp.ne.s32.totalorder %s1638_s23, %s1429_s1  ;;  %p1435_p3 = scmp.lt.s32.totalorder %s1429_s1, %s1429_s1 }
  0x60   :  { %p1436_p4 = por %p1435_p3, %p1434_p2 }
  0x62   :  { %p1437_p5 = pnand %p1436_p4, %p1430_p1 }
  0x64   :  { %1440 = shalt.err (!%p1437_p5)
}
  0x65   :  { %88 = dma.hbm_to_vmem [thread:$0]  %s1730_s7, 2048, %s1638_s23, [#allocation9], %s1496_s18, %s1496_s18, %s1497_s19  }
  0x66   :  { %s1505_s26 = smov [#allocation13]   ;;  %s1441_s0 = scalar_lea.hbm %s1734_s11, 4096 }
  0x67   :  { %s110_s17 = sshll.u32 %s1505_s26, 4  ;;  %p1442_p6 = scmp.ne.s32.totalorder %s1734_s11, %s1441_s0  ;;  %s111_s17 = int_to_ptr.vmem [resolvable:$true] %s110_s17 }
  0x68   :  { %p1445_p7 = scmp.lt.u32.totalorder %s1441_s0, %s1734_s11 }
  0x6a   :  { %p1447_p8 = pnand %p1445_p7, %p1442_p6 }
  0x6c   :  { %1450 = shalt.err (!%p1447_p8)
}
  0x6d   :  { %s1451_s28 = scalar_lea.vmem %s111_s17, 4096  ;;  %p1456_p10 = scmp.lt.s32.totalorder %s111_s17, %s111_s17 }
  0x6e   :  { %p1452_p9 = scmp.ne.s32.totalorder %s111_s17, %s1451_s28  ;;  %p1457_p11 = scmp.lt.s32.totalorder %s1451_s28, %s1451_s28 }
  0x70   :  { %p1458_p12 = por %p1457_p11, %p1456_p10 }
  0x72   :  { %p1459_p13 = pnand %p1458_p12, %p1452_p9 }
  0x74   :  { %1462 = shalt.err (!%p1459_p13)
}
  0x75   :  { %116 = dma.hbm_to_vmem [thread:$0]  %s1734_s11, 4096, %s111_s17, [#allocation12], %s1501_s9, %s1501_s9, %s1502_s25  }
  0x76   :  { %1485 = dma.done.wait [#allocation3], 512  }
  0x77   :  { %1486 = vsyncadd [#allocation3], 4294966784 }
  0x78   :  { %1487 = dma.done.wait [#allocation6], 6144  }
  0x79   :  { %1488 = vsyncadd [#allocation6], 4294961152 }
  0x7a   :  { %1489 = dma.done.wait [#allocation9], 4096  }
  0x7b   :  { %1490 = vsyncadd [#allocation9], 4294963200 }
  0x7c   :  { %1491 = dma.done.wait [#allocation12], 6144  }
  0x7d   :  { %1492 = vsyncadd [#allocation12], 4294961152  ;;  %v160_v0 = vld [vmem:[#allocation5 + $0x80] sm:$0xff]  ;;  %v161_v1 = vld [vmem:[#allocation5 + $0x88] sm:$0xff] }
  0x7e   :  { %v144_v2 = vld [vmem:[#allocation5] sm:$0xff]  ;;  %v1076_v3 = vpack.c.bf16 %v161_v1, %v160_v0  ;;  %v145_v4 = vld [vmem:[#allocation5 + $0x8] sm:$0xff]  ;;  %v162_v5 = vld [vmem:[#allocation5 + $0x90] sm:$0xff] }
  0x7f   :  { %v163_v6 = vld [vmem:[#allocation5 + $0x98] sm:$0xff]  ;;  %v1078_v7 = vpack.c.bf16 %v145_v4, %v144_v2  ;;  %v146_v9 = vld [vmem:[#allocation5 + $0x10] sm:$0xff]  ;;  %v164_v11 = vld [vmem:[#allocation5 + $0xa0] sm:$0xff] }
  0x80   :  { %v1080_v8 = vpack.c.bf16 %v163_v6, %v162_v5  ;;  %v147_v10 = vld [vmem:[#allocation5 + $0x18] sm:$0xff]  ;;  %1077 = vmatprep.subr.bf16.mxu0 %v1076_v3  ;;  %v165_v12 = vld [vmem:[#allocation5 + $0xa8] sm:$0xff]  ;;  %v148_v15 = vld [vmem:[#allocation5 + $0x20] sm:$0xff] }
  0x81   :  { %1079 = vmatpush3.bf16.msra.mxu0 %v1078_v7  ;;  %v1082_v13 = vpack.c.bf16 %v147_v10, %v146_v9  ;;  %v1084_v14 = vpack.c.bf16 %v165_v12, %v164_v11  ;;  %v149_v16 = vld [vmem:[#allocation5 + $0x28] sm:$0xff]  ;;  %v166_v17 = vld [vmem:[#allocation5 + $0xb0] sm:$0xff]  ;;  %v167_v18 = vld [vmem:[#allocation5 + $0xb8] sm:$0xff] }
  0x82   :  { %1081 = vmatprep.subr.bf16.mxu0 %v1080_v8  ;;  %v1086_v19 = vpack.c.bf16 %v149_v16, %v148_v15  ;;  %v1088_v20 = vpack.c.bf16 %v167_v18, %v166_v17  ;;  %v150_v21 = vld [vmem:[#allocation5 + $0x30] sm:$0xff]  ;;  %v151_v22 = vld [vmem:[#allocation5 + $0x38] sm:$0xff]  ;;  %v168_v23 = vld [vmem:[#allocation5 + $0xc0] sm:$0xff] }
  0x83   :  { %v169_v24 = vld [vmem:[#allocation5 + $0xc8] sm:$0xff]  ;;  %v152_v26 = vld [vmem:[#allocation5 + $0x40] sm:$0xff]  ;;  %v1090_v27 = vpack.c.bf16 %v151_v22, %v150_v21  ;;  %v262_v30 = vld [vmem:[#allocation7 + $0x10] sm:$0xff] }
  0x84   :  { %v141_v25 = vld [vmem:[#allocation2 + $0x8] sm:$0xff]  ;;  %v260_v28 = vld [vmem:[#allocation7] sm:$0xff]  ;;  %v1092_v31 = vpack.c.bf16 %v169_v24, %v168_v23  ;;  %v170_v33 = vld [vmem:[#allocation5 + $0xd0] sm:$0xff] }
  0x85   :  { %1083 = vmatpush3.bf16.msra.mxu0 %v1082_v13  ;;  %247 = vmatprep.mubr.f32.mxu0 %v141_v25  ;;  %v261_v29 = vld [vmem:[#allocation7 + $0x8] sm:$0xff]  ;;  %v263_v35 = vld [vmem:[#allocation7 + $0x18] sm:$0xff]  ;;  %v264_v38 = vld [vmem:[#allocation7 + $0x20] sm:$0xff] }
  0x86   :  { %1085 = vmatprep.subr.bf16.mxu0 %v1084_v14  ;;  %v153_v32 = vld [vmem:[#allocation5 + $0x48] sm:$0xff]  ;;  %v1108_v34 = vpack.c.bf16 %v261_v29, %v260_v28  ;;  %v171_v36 = vld [vmem:[#allocation5 + $0xd8] sm:$0xff]  ;;  %v1112_v37 = vpack.c.bf16 %v263_v35, %v262_v30  ;;  %v154_v42 = vld [vmem:[#allocation5 + $0x50] sm:$0xff] }
  0x87   :  { %v265_v39 = vld [vmem:[#allocation7 + $0x28] sm:$0xff]  ;;  %v1094_v40 = vpack.c.bf16 %v153_v32, %v152_v26  ;;  %v1096_v41 = vpack.c.bf16 %v171_v36, %v170_v33  ;;  %v155_v43 = vld [vmem:[#allocation5 + $0x58] sm:$0xff]  ;;  %v172_v45 = vld [vmem:[#allocation5 + $0xe0] sm:$0xff] }
  0x88   :  { %1109 = vmatprep.subr.bf16.mxu1 %v1108_v34  ;;  %v1116_v44 = vpack.c.bf16 %v265_v39, %v264_v38  ;;  %v173_v46 = vld [vmem:[#allocation5 + $0xe8] sm:$0xff]  ;;  %v1098_v47 = vpack.c.bf16 %v155_v43, %v154_v42  ;;  %v156_v49 = vld [vmem:[#allocation5 + $0x60] sm:$0xff]  ;;  %v174_v51 = vld [vmem:[#allocation5 + $0xf0] sm:$0xff] }
  0x89   :  { %1087 = vmatpush3.bf16.msra.mxu0 %v1086_v19  ;;  %1111 = vmatpush3.bf16.msra.mxu1 %v1108_v34  ;;  %v1100_v48 = vpack.c.bf16 %v173_v46, %v172_v45  ;;  %v157_v50 = vld [vmem:[#allocation5 + $0x68] sm:$0xff]  ;;  %v175_v52 = vld [vmem:[#allocation5 + $0xf8] sm:$0xff]  ;;  %v158_v55 = vld [vmem:[#allocation5 + $0x70] sm:$0xff] }
  0x8a   :  { %1089 = vmatprep.subr.bf16.mxu0 %v1088_v20  ;;  %1113 = vmatprep.subr.bf16.mxu1 %v1112_v37  ;;  %v1102_v53 = vpack.c.bf16 %v157_v50, %v156_v49  ;;  %v1104_v54 = vpack.c.bf16 %v175_v52, %v174_v51  ;;  %v159_v56 = vld [vmem:[#allocation5 + $0x78] sm:$0xff]  ;;  %v140_v58 = vld [vmem:[#allocation2] sm:$0xff]  ;;  %v142_v60 = vld [vmem:[#allocation2 + $0x10] sm:$0xff] }
  0x8b   :  { %v1106_v57 = vpack.c.bf16 %v159_v56, %v158_v55  ;;  %v143_v59 = vld [vmem:[#allocation2 + $0x18] sm:$0xff]  ;;  %v266_v61 = vld [vmem:[#allocation7 + $0x30] sm:$0xff]  ;;  %v268_v0 = vld [vmem:[#allocation7 + $0x40] sm:$0xff] }
  0x8c   :  { %v267_v62 = vld [vmem:[#allocation7 + $0x38] sm:$0xff]  ;;  %v269_v1 = vld [vmem:[#allocation7 + $0x48] sm:$0xff]  ;;  %v270_v3 = vld [vmem:[#allocation7 + $0x50] sm:$0xff] }
  0x8d   :  { %1091 = vmatpush3.bf16.msra.mxu0 %v1090_v27  ;;  %1115 = vmatpush3.bf16.msra.mxu1 %v1112_v37  ;;  %v1120_v63 = vpack.c.bf16 %v267_v62, %v266_v61  ;;  %v1124_v2 = vpack.c.bf16 %v269_v1, %v268_v0  ;;  %v271_v4 = vld [vmem:[#allocation7 + $0x58] sm:$0xff]  ;;  %v272_v6 = vld [vmem:[#allocation7 + $0x60] sm:$0xff]  ;;  %v273_v7 = vld [vmem:[#allocation7 + $0x68] sm:$0xff] }
  0x8e   :  { %1093 = vmatprep.subr.bf16.mxu0 %v1092_v31  ;;  %1117 = vmatprep.subr.bf16.mxu1 %v1116_v44  ;;  %v1128_v5 = vpack.c.bf16 %v271_v4, %v270_v3  ;;  %v274_v8 = vld [vmem:[#allocation7 + $0x70] sm:$0xff]  ;;  %v1132_v9 = vpack.c.bf16 %v273_v7, %v272_v6  ;;  %v275_v10 = vld [vmem:[#allocation7 + $0x78] sm:$0xff]  ;;  %v360_v12 = vld [vmem:[#allocation8] sm:$0xff] }
  0x8f   :  { %v1136_v11 = vpack.c.bf16 %v275_v10, %v274_v8  ;;  %v361_v13 = vld [vmem:[#allocation8 + $0x8] sm:$0xff]  ;;  %v362_v14 = vld [vmem:[#allocation8 + $0x10] sm:$0xff]  ;;  %v363_v16 = vld [vmem:[#allocation8 + $0x18] sm:$0xff] }
  0x90   :  { %v1140_v15 = vpack.c.bf16 %v361_v13, %v360_v12  ;;  %v1144_v17 = vpack.c.bf16 %v363_v16, %v362_v14  ;;  %v364_v18 = vld [vmem:[#allocation8 + $0x20] sm:$0xff]  ;;  %v365_v19 = vld [vmem:[#allocation8 + $0x28] sm:$0xff]  ;;  %v366_v21 = vld [vmem:[#allocation8 + $0x30] sm:$0xff] }
  0x91   :  { %1095 = vmatpush3.bf16.msra.mxu0 %v1094_v40  ;;  %1119 = vmatpush3.bf16.msra.mxu1 %v1116_v44  ;;  %v1148_v20 = vpack.c.bf16 %v365_v19, %v364_v18  ;;  %v367_v22 = vld [vmem:[#allocation8 + $0x38] sm:$0xff]  ;;  %v821_v25 = vld [vmem:[%s1725_s2] ss:$0 sm:$0xff]  ;;  %v369_v36 = vld [vmem:[#allocation8 + $0x48] sm:$0xff] }
  0x92   :  { %1097 = vmatprep.subr.bf16.mxu0 %v1096_v41  ;;  %1121 = vmatprep.subr.bf16.mxu1 %v1120_v63  ;;  %v1152_v23 = vpack.c.bf16 %v367_v22, %v366_v21  ;;  %v368_v35 = vld [vmem:[#allocation8 + $0x40] sm:$0xff]  ;;  %v370_v38 = vld [vmem:[#allocation8 + $0x50] sm:$0xff]  ;;  %v371_v39 = vld [vmem:[#allocation8 + $0x58] sm:$0xff] }
  0x93   :  { %v1156_v37 = vpack.c.bf16 %v369_v36, %v368_v35  ;;  %v1160_v40 = vpack.c.bf16 %v371_v39, %v370_v38  ;;  %v372_v41 = vld [vmem:[#allocation8 + $0x60] sm:$0xff]  ;;  %v373_v42 = vld [vmem:[#allocation8 + $0x68] sm:$0xff]  ;;  %v374_v43 = vld [vmem:[#allocation8 + $0x70] sm:$0xff] }
  0x94   :  { %v1164_v44 = vpack.c.bf16 %v373_v42, %v372_v41  ;;  %v375_v45 = vld [vmem:[#allocation8 + $0x78] sm:$0xff]  ;;  %v462_v49 = vld [vmem:[#allocation10 + $0x10] sm:$0xff]  ;;  %v469_v3 = vld [vmem:[#allocation10 + $0x48] sm:$0xff] }
  0x95   :  { %1099 = vmatpush3.bf16.msra.mxu0 %v1098_v47  ;;  %1123 = vmatpush3.bf16.msra.mxu1 %v1120_v63  ;;  %v1168_v46 = vpack.c.bf16 %v375_v45, %v374_v43  ;;  %v460_v47 = vld [vmem:[#allocation10] sm:$0xff]  ;;  %v463_v51 = vld [vmem:[#allocation10 + $0x18] sm:$0xff]  ;;  %v466_v56 = vld [vmem:[#allocation10 + $0x30] sm:$0xff] }
  0x96   :  { %1101 = vmatprep.subr.bf16.mxu0 %v1100_v48  ;;  %1125 = vmatprep.subr.bf16.mxu1 %v1124_v2  ;;  %v461_v48 = vld [vmem:[#allocation10 + $0x8] sm:$0xff]  ;;  %v1176_v52 = vpack.c.bf16 %v463_v51, %v462_v49  ;;  %v471_v6 = vld [vmem:[#allocation10 + $0x58] sm:$0xff]  ;;  %v472_v8 = vld [vmem:[#allocation10 + $0x60] sm:$0xff] }
  0x97   :  { %v1172_v50 = vpack.c.bf16 %v461_v48, %v460_v47  ;;  %v474_v10 = vld [vmem:[#allocation10 + $0x70] sm:$0xff]  ;;  %v475_v12 = vld [vmem:[#allocation10 + $0x78] sm:$0xff]  ;;  %v560_v14 = vld [vmem:[#allocation11] sm:$0xff] }
  0x98   :  { %v1200_v13 = vpack.c.bf16 %v475_v12, %v474_v10  ;;  %v562_v16 = vld [vmem:[#allocation11 + $0x10] sm:$0xff]  ;;  %v563_v18 = vld [vmem:[#allocation11 + $0x18] sm:$0xff]  ;;  %v565_v21 = vld [vmem:[#allocation11 + $0x28] sm:$0xff] }
  0x99   :  { %1103 = vmatpush3.bf16.msra.mxu0 %v1102_v53  ;;  %1127 = vmatpush3.bf16.msra.mxu1 %v1124_v2  ;;  %v464_v53 = vld [vmem:[#allocation10 + $0x20] sm:$0xff]  ;;  %v1208_v19 = vpack.c.bf16 %v563_v18, %v562_v16  ;;  %v570_v36 = vld [vmem:[#allocation11 + $0x50] sm:$0xff]  ;;  %v575_v43 = vld [vmem:[#allocation11 + $0x78] sm:$0xff] }
  0x9a   :  { %1105 = vmatprep.subr.bf16.mxu0 %v1104_v54  ;;  %1129 = vmatprep.subr.bf16.mxu1 %v1128_v5  ;;  %v465_v54 = vld [vmem:[#allocation10 + $0x28] sm:$0xff]  ;;  %v468_v2 = vld [vmem:[#allocation10 + $0x40] sm:$0xff]  ;;  %v574_v41 = vld [vmem:[#allocation11 + $0x70] sm:$0xff] }
  0x9b   :  { %v1180_v55 = vpack.c.bf16 %v465_v54, %v464_v53  ;;  %v1188_v4 = vpack.c.bf16 %v469_v3, %v468_v2  ;;  %v572_v39 = vld [vmem:[#allocation11 + $0x60] sm:$0xff]  ;;  %v661_v45 = vld [vmem:[#allocation13 + $0x8] sm:$0xff]  ;;  %v662_v49 = vld [vmem:[#allocation13 + $0x10] sm:$0xff] }
  0x9c   :  { %v660_v47 = vld [vmem:[#allocation13] sm:$0xff]  ;;  %v667_v51 = vld [vmem:[#allocation13 + $0x38] sm:$0xff]  ;;  %v674_v3 = vld [vmem:[#allocation13 + $0x70] sm:$0xff] }
  0x9d   :  { %1107 = vmatpush3.bf16.msra.mxu0 %v1106_v57  ;;  %1131 = vmatpush3.bf16.msra.mxu1 %v1128_v5  ;;  %v467_v57 = vld [vmem:[#allocation10 + $0x38] sm:$0xff]  ;;  %v470_v5 = vld [vmem:[#allocation10 + $0x50] sm:$0xff]  ;;  %v664_v54 = vld [vmem:[#allocation13 + $0x20] sm:$0xff] }
  0x9e   :  { %1133 = vmatprep.subr.bf16.mxu1 %v1132_v9  ;;  %1141 = vmatprep.subr.bf16.mxu0 %v1140_v15  ;;  %v1192_v7 = vpack.c.bf16 %v471_v6, %v470_v5  ;;  %v672_v2 = vld [vmem:[#allocation13 + $0x60] sm:$0xff]  ;;  %v679_v5 = vld [vmem:[#allocation13 + $0x98] sm:$0xff]  ;;  %v678_v16 = vld [vmem:[#allocation13 + $0x90] sm:$0xff] }
  0x9f   :  { %v1250_v6 = vpack.c.bf16 %v674_v3, %v672_v2  ;;  %v681_v18 = vld [vmem:[#allocation13 + $0xa8] sm:$0xff] }
  0xa0   :  { %248 = vmatmul.mubr.f32.vlgmr.msra.gmra.mrb[0].mxu0 %v140_v58  ;;  %v1184_v58 = vpack.c.bf16 %v467_v57, %v466_v56  ;;  %v669_v56 = vld [vmem:[#allocation13 + $0x48] sm:$0xff]  ;;  %v671_v57 = vld [vmem:[#allocation13 + $0x58] sm:$0xff] }
  0xa1   :  { %252 = vmatprep.mubr.f32.mxu0 %v143_v59  ;;  %1135 = vmatpush3.bf16.msra.mxu1 %v1132_v9  ;;  %v822_v59 = vld [vmem:[%s1727_s4] ss:$0 sm:$0xff]  ;;  %v473_v9 = vld [vmem:[#allocation10 + $0x68] sm:$0xff] }
  0xa2   :  { %1137 = vmatprep.subr.bf16.mxu1 %v1136_v11  ;;  %1143 = vmatpush3.bf16.msra.mxu0 %v1140_v15  ;;  %v561_v15 = vld [vmem:[#allocation11 + $0x8] sm:$0xff] }
  0xa3   :  { %1145 = vmatprep.subr.bf16.mxu0 %v1144_v17 }
  0xa4   :  { %253 = vmatmul.mubr.f32.gmra.mrb[2].mxu0 %v142_v60 }
  0xa5   :  { %1139 = vmatpush3.bf16.msra.mxu1 %v1136_v11  ;;  %v1196_v11 = vpack.c.bf16 %v473_v9, %v472_v8  ;;  %v824_v8 = vld [vmem:[%s1731_s8] ss:$0 sm:$0xff] }
  0xa6   :  { %1147 = vmatpush3.bf16.msra.mxu0 %v1144_v17  ;;  %1173 = vmatprep.subr.bf16.mxu1 %v1172_v50  ;;  %v1204_v17 = vpack.c.bf16 %v561_v15, %v560_v14  ;;  %v676_v15 = vld [vmem:[#allocation13 + $0x80] sm:$0xff] }
  0xa7   :  { %1149 = vmatprep.subr.bf16.mxu0 %v1148_v20 }
  0xaa   :  { %1151 = vmatpush3.bf16.msra.mxu0 %v1148_v20  ;;  %v564_v20 = vld [vmem:[#allocation11 + $0x20] sm:$0xff] }
  0xab   :  { %1153 = vmatprep.subr.bf16.mxu0 %v1152_v23  ;;  %v1212_v22 = vpack.c.bf16 %v565_v21, %v564_v20  ;;  %v680_v21 = vld [vmem:[#allocation13 + $0xa0] sm:$0xff] }
  0xae   :  { %1155 = vmatpush3.bf16.msra.mxu0 %v1152_v23  ;;  %v566_v23 = vld [vmem:[#allocation11 + $0x30] sm:$0xff] }
  0xaf   :  { %1157 = vmatprep.subr.bf16.mxu0 %v1156_v37 }
  0xb2   :  { %1159 = vmatpush3.bf16.msra.mxu0 %v1156_v37  ;;  %v571_v37 = vld [vmem:[#allocation11 + $0x58] sm:$0xff] }
  0xb3   :  { %1161 = vmatprep.subr.bf16.mxu0 %v1160_v40  ;;  %v1224_v38 = vpack.c.bf16 %v571_v37, %v570_v36  ;;  %v825_v37 = vld [vmem:[%s1733_s10] ss:$0 sm:$0xff]  ;;  %s1507_s10 = smov [#allocation14]  }
  0xb6   :  { %1163 = vmatpush3.bf16.msra.mxu0 %v1160_v40  ;;  %v573_v40 = vld [vmem:[#allocation11 + $0x68] sm:$0xff] }
  0xb7   :  { %1165 = vmatprep.subr.bf16.mxu0 %v1164_v44  ;;  %v1228_v42 = vpack.c.bf16 %v573_v40, %v572_v39 }
  0xba   :  { %1167 = vmatpush3.bf16.msra.mxu0 %v1164_v44  ;;  %v1232_v44 = vpack.c.bf16 %v575_v43, %v574_v41 }
  0xbb   :  { %1169 = vmatprep.subr.bf16.mxu0 %v1168_v46 }
  0xbe   :  { %1171 = vmatpush3.bf16.msra.mxu0 %v1168_v46  ;;  %v663_v46 = vld [vmem:[#allocation13 + $0x18] sm:$0xff] }
  0xbf   :  { %1205 = vmatprep.subr.bf16.mxu0 %v1204_v17  ;;  %v1236_v48 = vpack.c.bf16 %v663_v46, %v661_v45 }
 0x173   :  { %v858_v24 = vpop.f32.mrb[0].mxu0 }
 0x174   :  { %v859_v26 = vpop.f32.mrb[1].mxu0 }
 0x175   :  { %v860_v27 = vadd.f32 %v859_v26, %v858_v24  ;;  %v567_v24 = vld [vmem:[#allocation11 + $0x38] sm:$0xff]  ;;  %v823_v26 = vld [vmem:[%s1729_s6] ss:$0 sm:$0xff] }
 0x177   :  { %v250_v28 = vadd.f32 %v860_v27, %v821_v25  ;;  %v861_v29 = vpop.f32.mrb[2].mxu0 }
 0x178   :  { %v862_v30 = vpop.f32.mrb[3].mxu0 }
 0x179   :  { %v863_v31 = vadd.f32 %v862_v30, %v861_v29  ;;  %1281 = vtanh.f32 %v250_v28 }
 0x17b   :  { %v255_v32 = vadd.f32 %v863_v31, %v821_v25  ;;  %v1216_v25 = vpack.c.bf16 %v567_v24, %v566_v23  ;;  %v685_v24 = vld [vmem:[#allocation13 + $0xc8] sm:$0xff] }
 0x17d   :  { %1283 = vtanh.f32 %v255_v32 }
 0x183   :  { %v1282_v33 = vpop.eup %1281 }
 0x184   :  { %968 = vmatprep.mubr.f32.mxu1 %v1282_v33  ;;  %v568_v33 = vld [vmem:[#allocation11 + $0x40] sm:$0xff] }
 0x187   :  { %v1284_v34 = vpop.eup %1283 }
 0x188   :  { %969 = vmatmul.mubr.f32.vlgmr.msra.gmra.mrb[0].mxu1 %v1284_v34  ;;  %v569_v34 = vld [vmem:[#allocation11 + $0x48] sm:$0xff] }
 0x189   :  { %1175 = vmatpush3.bf16.msra.mxu1 %v1172_v50  ;;  %v1220_v35 = vpack.c.bf16 %v569_v34, %v568_v33  ;;  %v665_v50 = vld [vmem:[#allocation13 + $0x28] sm:$0xff]  ;;  %v688_v34 = vld [vmem:[#allocation13 + $0xe0] sm:$0xff] }
 0x18a   :  { %1177 = vmatprep.subr.bf16.mxu1 %v1176_v52  ;;  %v1240_v53 = vpack.c.bf16 %v667_v51, %v665_v50 }
 0x18d   :  { %1179 = vmatpush3.bf16.msra.mxu1 %v1176_v52  ;;  %v1238_v52 = vpack.c.bf16 %v662_v49, %v660_v47  ;;  %v692_v47 = vld [vmem:[%s1735_s12] sm:$0x3]  ;;  %s806_s12 = sshll.u32 %s1507_s10, 4  ;;  %s807_s12 = int_to_ptr.vmem [resolvable:$true] %s806_s12 }
 0x18e   :  { %1181 = vmatprep.subr.bf16.mxu1 %v1180_v55  ;;  %s1463_s3 = scalar_lea.vmem %s807_s12, 512  ;;  %p1468_p1 = scmp.lt.s32.totalorder %s807_s12, %s807_s12 }
 0x18f   :  { %p1464_p0 = scmp.ne.s32.totalorder %s807_s12, %s1463_s3  ;;  %p1469_p2 = scmp.lt.s32.totalorder %s1463_s3, %s1463_s3 }
 0x191   :  { %1183 = vmatpush3.bf16.msra.mxu1 %v1180_v55  ;;  %v666_v55 = vld [vmem:[#allocation13 + $0x30] sm:$0xff]  ;;  %p1470_p3 = por %p1469_p2, %p1468_p1 }
 0x192   :  { %1185 = vmatprep.subr.bf16.mxu1 %v1184_v58 }
 0x193   :  { %p1471_p4 = pnand %p1470_p3, %p1464_p0 }
 0x195   :  { %1187 = vmatpush3.bf16.msra.mxu1 %v1184_v58  ;;  %v1242_v58 = vpack.c.bf16 %v666_v55, %v664_v54 }
 0x196   :  { %1189 = vmatprep.subr.bf16.mxu1 %v1188_v4 }
 0x199   :  { %1191 = vmatpush3.bf16.msra.mxu1 %v1188_v4  ;;  %v677_v4 = vld [vmem:[#allocation13 + $0x88] sm:$0xff] }
 0x19a   :  { %1193 = vmatprep.subr.bf16.mxu1 %v1192_v7 }
 0x19d   :  { %1195 = vmatpush3.bf16.msra.mxu1 %v1192_v7  ;;  %v1252_v7 = vpack.c.bf16 %v679_v5, %v677_v4 }
 0x19e   :  { %1197 = vmatprep.subr.bf16.mxu1 %v1196_v11 }
 0x1a1   :  { %1199 = vmatpush3.bf16.msra.mxu1 %v1196_v11 }
 0x1a2   :  { %1201 = vmatprep.subr.bf16.mxu1 %v1200_v13 }
 0x1a5   :  { %1203 = vmatpush3.bf16.msra.mxu1 %v1200_v13 }
 0x1a6   :  { %1237 = vmatprep.subr.bf16.mxu1 %v1236_v48 }
 0x25b   :  { %v970_v60 = vpop.f32.mrb[0].mxu1 }
 0x25c   :  { %v355_v61 = vadd.f32 %v970_v60, %v822_v59  ;;  %v349_v62 = vpop.f32.mrb[1].mxu1  ;;  %v668_v60 = vld [vmem:[#allocation13 + $0x40] sm:$0xff] }
 0x25d   :  { %v350_v63 = vadd.f32 %v822_v59, %v349_v62  ;;  %v1244_v59 = vpack.c.bf16 %v671_v57, %v669_v56  ;;  %v673_v62 = vld [vmem:[#allocation13 + $0x68] sm:$0xff] }
 0x25f   :  { %1285 = vtanh.f32 %v350_v63  ;;  %v675_v63 = vld [vmem:[#allocation13 + $0x78] sm:$0xff] }
 0x260   :  { %1287 = vtanh.f32 %v355_v61  ;;  %v670_v61 = vld [vmem:[#allocation13 + $0x50] sm:$0xff] }
 0x269   :  { %v1286_v0 = vpop.eup %1285 }
 0x26a   :  { %v1288_v1 = vpop.eup %1287  ;;  %1003 = vmatprep.mubr.f32.mxu0 %v1286_v0  ;;  %v1246_v0 = vpack.c.bf16 %v670_v61, %v668_v60 }
 0x26b   :  { %1004 = vmatmul.mubr.f32.vlgmr.msra.gmra.mrb[4].mxu0 %v1288_v1  ;;  %v1248_v1 = vpack.c.bf16 %v675_v63, %v673_v62 }
 0x26c   :  { %1207 = vmatpush3.bf16.msra.mxu0 %v1204_v17  ;;  %v1254_v17 = vpack.c.bf16 %v678_v16, %v676_v15 }
 0x26d   :  { %1209 = vmatprep.subr.bf16.mxu0 %v1208_v19 }
 0x270   :  { %1211 = vmatpush3.bf16.msra.mxu0 %v1208_v19  ;;  %v683_v19 = vld [vmem:[#allocation13 + $0xb8] sm:$0xff] }
 0x271   :  { %1213 = vmatprep.subr.bf16.mxu0 %v1212_v22  ;;  %v1256_v20 = vpack.c.bf16 %v683_v19, %v681_v18 }
 0x274   :  { %1215 = vmatpush3.bf16.msra.mxu0 %v1212_v22  ;;  %v682_v22 = vld [vmem:[#allocation13 + $0xb0] sm:$0xff] }
 0x275   :  { %1217 = vmatprep.subr.bf16.mxu0 %v1216_v25  ;;  %v1258_v23 = vpack.c.bf16 %v682_v22, %v680_v21 }
 0x278   :  { %1219 = vmatpush3.bf16.msra.mxu0 %v1216_v25  ;;  %v687_v25 = vld [vmem:[#allocation13 + $0xd8] sm:$0xff] }
 0x279   :  { %1221 = vmatprep.subr.bf16.mxu0 %v1220_v35 }
 0x27c   :  { %1223 = vmatpush3.bf16.msra.mxu0 %v1220_v35  ;;  %v690_v35 = vld [vmem:[#allocation13 + $0xf0] sm:$0xff] }
 0x27d   :  { %1225 = vmatprep.subr.bf16.mxu0 %v1224_v38  ;;  %v1266_v36 = vpack.c.bf16 %v690_v35, %v688_v34 }
 0x280   :  { %1227 = vmatpush3.bf16.msra.mxu0 %v1224_v38 }
 0x281   :  { %1229 = vmatprep.subr.bf16.mxu0 %v1228_v42 }
 0x284   :  { %1231 = vmatpush3.bf16.msra.mxu0 %v1228_v42 }
 0x285   :  { %1233 = vmatprep.subr.bf16.mxu0 %v1232_v44 }
 0x288   :  { %1235 = vmatpush3.bf16.msra.mxu0 %v1232_v44  ;;  %v694_v44 = vlaneseq }
 0x28a   :  { %v695_v45 = vshrl.u32 %v694_v44, 7 }
 0x28c   :  { %v696_v46 = vsub.s32 0, %v695_v45  ;;  %v700_v48 = vsub.s32 1, %v695_v45 }
 0x28e   :  { %v697_v49 = vrot.slane %v692_v47, %v696_v46  ;;  %v701_v50 = vrot.slane %v692_v47, %v700_v48 }
 0x33e   :  { %v1005_v27 = vpop.f32.mrb[4].mxu0 }
 0x33f   :  { %v455_v28 = vadd.f32 %v1005_v27, %v823_v26  ;;  %v449_v29 = vpop.f32.mrb[5].mxu0  ;;  %v1260_v27 = vpack.c.bf16 %v687_v25, %v685_v24 }
 0x340   :  { %v450_v30 = vadd.f32 %v823_v26, %v449_v29  ;;  %v684_v26 = vld [vmem:[#allocation13 + $0xc0] sm:$0xff]  ;;  %v689_v29 = vld [vmem:[#allocation13 + $0xe8] sm:$0xff] }
 0x342   :  { %1289 = vtanh.f32 %v450_v30  ;;  %v691_v30 = vld [vmem:[#allocation13 + $0xf8] sm:$0xff] }
 0x343   :  { %1291 = vtanh.f32 %v455_v28  ;;  %v686_v28 = vld [vmem:[#allocation13 + $0xd0] sm:$0xff]  ;;  %v1264_v33 = vpack.c.bf16 %v691_v30, %v689_v29 }
 0x34c   :  { %v1290_v31 = vpop.eup %1289 }
 0x34d   :  { %v1292_v32 = vpop.eup %1291  ;;  %1038 = vmatprep.mubr.f32.mxu1 %v1290_v31  ;;  %v1506_v31 = vmov 0.0  }
 0x34e   :  { %1039 = vmatmul.mubr.f32.vlgmr.msra.gmra.mrb[2].mxu1 %v1292_v32  ;;  %v1262_v32 = vpack.c.bf16 %v686_v28, %v684_v26 }
 0x34f   :  { %1239 = vmatpush1.bf16.msra.mxu1 %v1238_v52  ;;  %768 = vmatprep.mubr.f32.mxu1 %v1506_v31 }
 0x350   :  { %1241 = vmatprep.subr.bf16.mxu1 %v1240_v53 }
 0x353   :  { %1243 = vmatpush1.bf16.msra.mxu1 %v1242_v58 }
 0x354   :  { %1245 = vmatprep.subr.bf16.mxu1 %v1244_v59 }
 0x357   :  { %1247 = vmatpush1.bf16.msra.mxu1 %v1246_v0 }
 0x358   :  { %1249 = vmatprep.subr.bf16.mxu1 %v1248_v1 }
 0x35b   :  { %1251 = vmatpush1.bf16.msra.mxu1 %v1250_v6 }
 0x35c   :  { %1253 = vmatprep.subr.bf16.mxu1 %v1252_v7 }
 0x35f   :  { %1255 = vmatpush1.bf16.msra.mxu1 %v1254_v17 }
 0x360   :  { %1257 = vmatprep.subr.bf16.mxu1 %v1256_v20 }
 0x363   :  { %1259 = vmatpush1.bf16.msra.mxu1 %v1258_v23 }
 0x364   :  { %1261 = vmatprep.subr.bf16.mxu1 %v1260_v27 }
 0x367   :  { %1263 = vmatpush1.bf16.msra.mxu1 %v1262_v32 }
 0x368   :  { %1265 = vmatprep.subr.bf16.mxu1 %v1264_v33 }
 0x36b   :  { %1267 = vmatpush1.bf16.msra.mxu1 %v1266_v36 }
 0x421   :  { %v1040_v9 = vpop.f32.mrb[2].mxu1 }
 0x422   :  { %v555_v10 = vadd.f32 %v1040_v9, %v824_v8  ;;  %v549_v11 = vpop.f32.mrb[3].mxu1 }
 0x423   :  { %v550_v12 = vadd.f32 %v824_v8, %v549_v11 }
 0x425   :  { %1293 = vtanh.f32 %v550_v12 }
 0x426   :  { %1295 = vtanh.f32 %v555_v10 }
 0x42f   :  { %v1294_v13 = vpop.eup %1293 }
 0x430   :  { %v1296_v14 = vpop.eup %1295  ;;  %1073 = vmatprep.mubr.f32.mxu0 %v1294_v13 }
 0x431   :  { %1074 = vmatmul.mubr.f32.vlgmr.msra.gmra.mrb[6].mxu0 %v1296_v14 }
 0x504   :  { %v1075_v38 = vpop.f32.mrb[6].mxu0 }
 0x505   :  { %v649_v39 = vpop.f32.mrb[7].mxu0  ;;  %v655_v41 = vadd.f32 %v1075_v38, %v825_v37 }
 0x506   :  { %v650_v40 = vadd.f32 %v825_v37, %v649_v39 }
 0x508   :  { %1297 = vtanh.f32 %v650_v40 }
 0x509   :  { %1299 = vtanh.f32 %v655_v41 }
 0x512   :  { %v1298_v42 = vpop.eup %1297 }
 0x513   :  { %769 = vmatmul.mubr.f32.vlgmr.msra.gmra.mrb[4].mxu1 %v1298_v42  ;;  %v1300_v43 = vpop.eup %1299 }
 0x514   :  { %774 = vmatprep.mubr.f32.mxu1 %v1506_v31 }
 0x517   :  { %775 = vmatmul.mubr.f32.gmra.mrb[6].mxu1 %v1300_v43 }
 0x5e6   :  { %v770_v51 = vpop.f32.mrb[4].mxu1 }
 0x5e7   :  { %v771_v52 = vadd.f32 %v770_v51, %v697_v49  ;;  %v772_v53 = vpop.f32.mrb[5].mxu1 }
 0x5e8   :  { %v773_v54 = vadd.f32 %v772_v53, %v701_v50 }
 0x5e9   :  { %v781_v55 = vmul.f32 0.5, %v771_v52 }
 0x5ea   :  { %v782_v56 = vmul.f32 0.5, %v773_v54  ;;  %v776_v57 = vpop.f32.mrb[6].mxu1 }
 0x5eb   :  { %1301 = vtanh.f32 %v781_v55  ;;  %v777_v58 = vadd.f32 %v776_v57, %v697_v49  ;;  %v778_v59 = vpop.f32.mrb[7].mxu1 }
 0x5ec   :  { %1303 = vtanh.f32 %v782_v56  ;;  %v779_v60 = vadd.f32 %v778_v59, %v701_v50 }
 0x5ed   :  { %v783_v61 = vmul.f32 0.5, %v777_v58 }
 0x5ee   :  { %v784_v62 = vmul.f32 0.5, %v779_v60 }
 0x5ef   :  { %1305 = vtanh.f32 %v783_v61 }
 0x5f0   :  { %1307 = vtanh.f32 %v784_v62 }
 0x5f5   :  { %v1302_v63 = vpop.eup %1301 }
 0x5f6   :  { %v1304_v0 = vpop.eup %1303  ;;  %v789_v1 = vmul.f32 0.5, %v1302_v63 }
 0x5f7   :  { %v790_v2 = vmul.f32 0.5, %v1304_v0 }
 0x5f8   :  { %v793_v3 = vadd.f32 0.5, %v789_v1 }
 0x5f9   :  { %v1306_v4 = vpop.eup %1305  ;;  %v794_v5 = vadd.f32 0.5, %v790_v2 }
 0x5fa   :  { %v1308_v6 = vpop.eup %1307  ;;  %797 = vst [vmem:[#allocation14] sm:$0xff] %v793_v3  ;;  %v791_v7 = vmul.f32 0.5, %v1306_v4 }
 0x5fb   :  { %798 = vst [vmem:[#allocation14 + $0x8] sm:$0xff] %v794_v5  ;;  %v792_v8 = vmul.f32 0.5, %v1308_v6 }
 0x5fc   :  { %v795_v9 = vadd.f32 0.5, %v791_v7 }
 0x5fd   :  { %v796_v10 = vadd.f32 0.5, %v792_v8 }
 0x5fe   :  { %799 = vst [vmem:[#allocation14 + $0x10] sm:$0xff] %v795_v9 }
 0x5ff   :  { %800 = vst [vmem:[#allocation14 + $0x18] sm:$0xff] %v796_v10 }
 0x600   :  { %1474 = shalt.err (!%p1471_p4)
}
 0x601   :  { %s1475_s17 = scalar_lea.hbm %s1736_s13, 512 }
 0x602   :  { %p1476_p5 = scmp.ne.s32.totalorder %s1736_s13, %s1475_s17  ;;  %p1479_p6 = scmp.lt.u32.totalorder %s1475_s17, %s1736_s13 }
 0x604   :  { %p1481_p7 = pnand %p1479_p6, %p1476_p5 }
 0x606   :  { %1484 = shalt.err (!%p1481_p7)
}
 0x607   :  { %812 = dma.vmem_to_hbm [thread:$0]  %s807_s12, 512, %s1736_s13, [#allocation4], %s1501_s9, %s1501_s9, %s1502_s25  }
 0x608   :  { %1493 = dma.done.wait [#allocation4], 512  }
 0x609   :  { %1494 = vsyncadd [#allocation4], 4294966784 }
 0x60a   :  { %816 = vsyncpa [#allocation3], 1 }
 0x60b   :  { %817 = vsyncpa [#allocation6], 1 }
 0x60c   :  { %818 = vsyncpa [#allocation9], 1 }
 0x60d   :  { %819 = vsyncpa [#allocation12], 1 }
 0x60e   :  { %820 = vsyncpa [#allocation4], 1 }

</bundles_post_ra>
